<compile_context>
chip_gen: v7x
topology: tpu7x:2x2x1
jax: 0.10.0
libtpu: 0.0.40
codegen_flags: <defaults>
</compile_context>

<pallas_src>
import jax
import jax.numpy as jnp
from jax import lax
from jax.experimental import pallas as pl
from jax.experimental.pallas import tpu as pltpu

# ----------------------------- synthetic config -----------------------------
T = 8                       # number of tokens
HIDDEN = 128                # hidden size
NUM_HEADS = 4
NUM_KV_HEADS = 2
HEAD_DIM = HIDDEN // NUM_HEADS          # 32
INTERMEDIATE = 256
VOCAB = 256
EPS = 1e-6
ROPE_BASE = 10000.0
Q_SIZE = NUM_HEADS * HEAD_DIM           # 128
KV_SIZE = NUM_KV_HEADS * HEAD_DIM       # 64
HALF = HEAD_DIM // 2                    # 16


# ------------------------------- kernel body --------------------------------
def fused_layer_kernel(ids_ref, hid_ref, cos_ref, sinf_ref, sins_ref,
                       embed_ref, wqkv_ref, wo_ref, wgu_ref, wd_ref,
                       wnorm_ref, out_ref, prenorm_ref):
    f32 = jnp.float32
    bf16 = jnp.bfloat16

    # ---- embed_tokens(input_ids): one-hot matmul gather on the MXU ---------
    # TODO(synk): at real vocab sizes replace with a scalar-prefetch row gather.
    ids = ids_ref[...]                                          # [T, 1] i32
    vocab_iota = lax.broadcasted_iota(jnp.int32, (T, VOCAB), 1)
    onehot = jnp.where(vocab_iota == ids, 1.0, 0.0).astype(bf16)  # [T, VOCAB]
    embeds = jnp.dot(onehot, embed_ref[...],
                     preferred_element_type=f32)                # [T, H] f32

    hidden = hid_ref[...]                                       # [T, H] f32
    residual = hidden

    # RMSNorm without gamma (gammas folded into downstream weight rows).
    def rms(x):
        return x * lax.rsqrt(jnp.mean(x * x, axis=-1, keepdims=True) + EPS)

    # ---- input_layernorm(embeds) || hidden_norm(hidden) -> concat [T, 2H] --
    x = jnp.concatenate([rms(embeds), rms(hidden)], axis=-1).astype(bf16)

    # ---- qkv_proj (attention scale pre-folded into the Q columns) ----------
    qkv = jnp.dot(x, wqkv_ref[...], preferred_element_type=f32)  # [T, 256] f32

    # ---- vreg-wide RoPE (neox rotate-half) ----------------------------------
    # Tables are tiled per-head across all 128 lanes; signs folded into sin.
    cos = cos_ref[...]                                           # [T, 128]
    sin_first = sinf_ref[...]                                    # [-sin | 0] per head
    sin_second = sins_ref[...]                                   # [0 | +sin] per head

    def rope128(v):                                              # v: [T, 128]
        # out[j] = v[j]*cos[j] + v[j+HALF]*(-sin) (first half of each head)
        #        + v[j-HALF]*(+sin)              (second half of each head)
        return (v * cos
                + pltpu.roll(v, Q_SIZE - HALF, axis=1) * sin_first
                + pltpu.roll(v, HALF, axis=1) * sin_second)

    q = rope128(qkv[:, :Q_SIZE]).astype(bf16)                    # [T, 128]
    kv_slab = qkv[:, Q_SIZE:]                                    # [T, 128] = k0|k1|v0|v1
    k = rope128(kv_slab)[:, :KV_SIZE]                            # [T, 64] f32 (V lanes discarded)
    v = kv_slab[:, KV_SIZE:].astype(bf16)                        # [T, 64]

    # Hoisted K transpose: one XLU transpose for all KV heads.
    kT_all = k.T.astype(bf16)                                    # [KV_SIZE, T]

    # ---- causal GQA attention, all heads in this single call ----------------
    row = lax.broadcasted_iota(jnp.int32, (T, T), 0)
    col = lax.broadcasted_iota(jnp.int32, (T, T), 1)
    causal = col <= row                                          # diag never masked

    rep = NUM_HEADS // NUM_KV_HEADS
    head_outs = []
    for h in range(NUM_HEADS):                                   # static, unrolled
        kv = h // rep
        qh = q[:, h * HEAD_DIM:(h + 1) * HEAD_DIM]               # [T, d] bf16
        kT = kT_all[kv * HEAD_DIM:(kv + 1) * HEAD_DIM, :]        # [d, T] bf16 (sublane slice)
        s = jnp.dot(qh, kT, preferred_element_type=f32)          # [T, T] (scale folded)
        s = jnp.where(causal, s, -1e30)
        m = jnp.max(s, axis=-1, keepdims=True)
        p = jnp.exp(s - m)
        p = p * pl.reciprocal(jnp.sum(p, axis=-1, keepdims=True), approx=True)
        vh = v[:, kv * HEAD_DIM:(kv + 1) * HEAD_DIM]             # [T, d] bf16
        head_outs.append(jnp.dot(p.astype(bf16), vh, preferred_element_type=f32))
    attn = jnp.concatenate(head_outs, axis=-1).astype(bf16)      # [T, 128] lane-dense

    # ---- o_proj --------------------------------------------------------------
    attn_out = jnp.dot(attn, wo_ref[...], preferred_element_type=f32)  # [T, H]

    # ---- post_attention_layernorm (fused add + RMSNorm; gamma in w_gate_up) -
    s1 = attn_out + residual
    h1 = rms(s1).astype(bf16)

    # ---- SwiGLU MLP ----------------------------------------------------------
    gu = jnp.dot(h1, wgu_ref[...], preferred_element_type=f32)   # [T, 2I]
    gate = gu[:, :INTERMEDIATE]
    up = gu[:, INTERMEDIATE:]
    act = (gate * jax.nn.sigmoid(gate) * up).astype(bf16)
    mlp_out = jnp.dot(act, wd_ref[...], preferred_element_type=f32)  # [T, H]

    # ---- final norm(mlp_out, residual) -> (hidden_states, hidden_prenorm) ---
    s2 = mlp_out + s1
    prenorm_ref[...] = s2
    out_ref[...] = rms(s2) * wnorm_ref[...]


# ------------------------------ pallas wrapper -------------------------------
def pallas_fused_layer(ids2d, hidden, cos_t, sin_first_t, sin_second_t, kweights):
    in_arrays = [
        ids2d, hidden, cos_t, sin_first_t, sin_second_t,
        kweights["embed"], kweights["w_qkv"], kweights["w_o"],
        kweights["w_gate_up"], kweights["w_down"], kweights["w_norm"],
    ]
    vmem = pl.BlockSpec(memory_space=pltpu.MemorySpace.VMEM)
    return pl.pallas_call(
        fused_layer_kernel,
        out_shape=(jax.ShapeDtypeStruct((T, HIDDEN), jnp.float32),
                   jax.ShapeDtypeStruct((T, HIDDEN), jnp.float32)),
        in_specs=[vmem] * len(in_arrays),
        out_specs=(vmem, vmem),
    )(*in_arrays)


# --------------------------------- glue (JAX) --------------------------------
def _inv_freq_angles(positions):
    inv_freq = 1.0 / (ROPE_BASE ** (jnp.arange(HALF, dtype=jnp.float32) * 2.0 / HEAD_DIM))
    return positions.astype(jnp.float32)[:, None] * inv_freq[None, :]   # [T, HALF]


def rope_cos_sin(positions):
    # reference-format tables: [T, HEAD_DIM]
    ang = _inv_freq_angles(positions)
    cos = jnp.concatenate([jnp.cos(ang), jnp.cos(ang)], axis=-1)
    sin = jnp.concatenate([jnp.sin(ang), jnp.sin(ang)], axis=-1)
    return cos, sin


def rope_tables(positions):
    # kernel-format tables, tiled across all heads: [T, Q_SIZE]
    ang = _inv_freq_angles(positions)
    c, s = jnp.cos(ang), jnp.sin(ang)
    z = jnp.zeros_like(s)
    n_rep = Q_SIZE // HEAD_DIM
    cos_t = jnp.tile(jnp.concatenate([c, c], axis=-1), (1, n_rep))
    sin_first_t = jnp.tile(jnp.concatenate([-s, z], axis=-1), (1, n_rep))
    sin_second_t = jnp.tile(jnp.concatenate([z, s], axis=-1), (1, n_rep))
    return cos_t, sin_first_t, sin_second_t


def prepare_kernel_weights(params, scale):
    # In production this folding is done once at weight-load time; here it is
    # traced under jit alongside the call (tiny cost at these shapes).
    f32, bf16 = jnp.float32, jnp.bfloat16
    w_qkv = params["w_qkv"].astype(f32)
    # fold input_layernorm / hidden_norm gammas into the qkv rows
    gamma_rows = jnp.concatenate([params["w_input_ln"].reshape(-1),
                                  params["w_hidden_ln"].reshape(-1)])[:, None]
    w_qkv = w_qkv * gamma_rows
    # fold the attention scale into the Q output columns (RoPE is linear)
    col_scale = jnp.concatenate([jnp.full((Q_SIZE,), scale, f32),
                                 jnp.ones((2 * KV_SIZE,), f32)])[None, :]
    w_qkv = w_qkv * col_scale
    # fold post_attention_layernorm gamma into gate_up rows
    w_gu = params["w_gate_up"].astype(f32) * params["w_post_ln"].reshape(-1)[:, None]
    return {
        "embed": params["embed"],
        "w_qkv": w_qkv.astype(bf16),
        "w_o": params["w_o"],
        "w_gate_up": w_gu.astype(bf16),
        "w_down": params["w_down"],
        "w_norm": params["w_norm"],
    }


def init_params(key):
    ks = jax.random.split(key, 6)
    s = 0.02
    bf16 = jnp.bfloat16
    return {
        "embed":       (jax.random.normal(ks[0], (VOCAB, HIDDEN), jnp.float32) * s).astype(bf16),
        "w_input_ln":  jnp.ones((1, HIDDEN), jnp.float32),
        "w_hidden_ln": jnp.ones((1, HIDDEN), jnp.float32),
        # QKVParallelLinear(2*H, head_dim, nq, nkv): stored transposed [in, out]
        "w_qkv":       (jax.random.normal(ks[1], (2 * HIDDEN, Q_SIZE + 2 * KV_SIZE), jnp.float32) * s).astype(bf16),
        "w_o":         (jax.random.normal(ks[2], (Q_SIZE, HIDDEN), jnp.float32) * s).astype(bf16),
        "w_post_ln":   jnp.ones((1, HIDDEN), jnp.float32),
        "w_gate_up":   (jax.random.normal(ks[3], (HIDDEN, 2 * INTERMEDIATE), jnp.float32) * s).astype(bf16),
        "w_down":      (jax.random.normal(ks[4], (INTERMEDIATE, HIDDEN), jnp.float32) * s).astype(bf16),
        "w_norm":      jnp.ones((1, HIDDEN), jnp.float32),
        # fc(3H -> H) exists in __init__ but is NOT used in LlamaModel.forward
        "w_fc":        (jax.random.normal(ks[5], (3 * HIDDEN, HIDDEN), jnp.float32) * s).astype(bf16),
    }


def llama_model_forward(params, input_ids, positions, hidden_states):
    cos_t, sin_first_t, sin_second_t = rope_tables(positions)
    kweights = prepare_kernel_weights(params, HEAD_DIM ** -0.5)
    ids2d = input_ids.reshape(T, 1).astype(jnp.int32)
    out, prenorm = pallas_fused_layer(ids2d, hidden_states, cos_t, sin_first_t,
                                      sin_second_t, kweights)
    return out, prenorm


# ------------------------- pure-JAX reference (f32) --------------------------
def reference_forward(params, input_ids, positions, hidden_states):
    f32 = jnp.float32

    def rms(x, w):
        var = jnp.mean(x * x, axis=-1, keepdims=True)
        return x * lax.rsqrt(var + EPS) * w

    input_embeds = jnp.take(params["embed"].astype(f32), input_ids, axis=0)
    residual = hidden_states
    x = jnp.concatenate([rms(input_embeds, params["w_input_ln"]),
                         rms(hidden_states, params["w_hidden_ln"])], axis=-1)
    qkv = x @ params["w_qkv"].astype(f32)

    cos, sin = rope_cos_sin(positions)

    def rope(xh):
        x1, x2 = xh[:, :HALF], xh[:, HALF:]
        return xh * cos + jnp.concatenate([-x2, x1], axis=-1) * sin

    scale = HEAD_DIM ** -0.5
    rep = NUM_HEADS // NUM_KV_HEADS
    mask = jnp.tril(jnp.ones((T, T), bool))
    outs = []
    for h in range(NUM_HEADS):
        qh = rope(qkv[:, h * HEAD_DIM:(h + 1) * HEAD_DIM])
        kv = h // rep
        kh = rope(qkv[:, Q_SIZE + kv * HEAD_DIM:Q_SIZE + (kv + 1) * HEAD_DIM])
        vh = qkv[:, Q_SIZE + KV_SIZE + kv * HEAD_DIM:Q_SIZE + KV_SIZE + (kv + 1) * HEAD_DIM]
        s = (qh @ kh.T) * scale
        s = jnp.where(mask, s, -jnp.inf)
        outs.append(jax.nn.softmax(s, axis=-1) @ vh)
    attn = jnp.concatenate(outs, axis=-1)
    attn_out = attn @ params["w_o"].astype(f32)

    s1 = attn_out + residual
    h1 = rms(s1, params["w_post_ln"])
    gu = h1 @ params["w_gate_up"].astype(f32)
    gate, up = gu[:, :INTERMEDIATE], gu[:, INTERMEDIATE:]
    mlp_out = (gate * jax.nn.sigmoid(gate) * up) @ params["w_down"].astype(f32)
    s2 = mlp_out + s1
    return rms(s2, params["w_norm"]), s2


# ------------------------------------ main -----------------------------------
if __name__ == "__main__":
    key = jax.random.PRNGKey(0)
    pkey, ikey, hkey = jax.random.split(key, 3)

    params = init_params(pkey)
    input_ids = jax.random.randint(ikey, (T,), 0, VOCAB, dtype=jnp.int32)
    positions = jnp.arange(T, dtype=jnp.int32)
    hidden_states = jax.random.normal(hkey, (T, HIDDEN), jnp.float32)

    fwd = jax.jit(llama_model_forward)
    out, prenorm = fwd(params, input_ids, positions, hidden_states)
    jax.block_until_ready((out, prenorm))

    ref_out, ref_prenorm = reference_forward(params, input_ids, positions, hidden_states)

    assert out.shape == (T, HIDDEN) and prenorm.shape == (T, HIDDEN)
    assert bool(jnp.all(jnp.isfinite(out))) and bool(jnp.all(jnp.isfinite(prenorm)))
    assert jnp.allclose(out, ref_out, atol=5e-2, rtol=5e-2)
    assert jnp.allclose(prenorm, ref_prenorm, atol=5e-2, rtol=5e-2)
    print("KERNEL_OK")
</pallas_src>

<mosaic_0001>
module attributes {stable_mosaic.version = 11 : i64} {
  func.func @fused_layer_kernel(%arg0: memref<8x1xi32, #tpu.memory_space<vmem>>, %arg1: memref<8x128xf32, #tpu.memory_space<vmem>>, %arg2: memref<8x128xf32, #tpu.memory_space<vmem>>, %arg3: memref<8x128xf32, #tpu.memory_space<vmem>>, %arg4: memref<8x128xf32, #tpu.memory_space<vmem>>, %arg5: memref<256x128xbf16, #tpu.memory_space<vmem>>, %arg6: memref<256x256xbf16, #tpu.memory_space<vmem>>, %arg7: memref<128x128xbf16, #tpu.memory_space<vmem>>, %arg8: memref<128x512xbf16, #tpu.memory_space<vmem>>, %arg9: memref<256x128xbf16, #tpu.memory_space<vmem>>, %arg10: memref<1x128xf32, #tpu.memory_space<vmem>>, %arg11: memref<8x128xf32, #tpu.memory_space<vmem>>, %arg12: memref<8x128xf32, #tpu.memory_space<vmem>>) attributes {dimension_semantics = [], scalar_prefetch = 0 : i64, scratch_operands = 0 : i64, tpu.core_type = #tpu.core_type<tc>} {
    %c0 = arith.constant 0 : index
    %c0_0 = arith.constant 0 : index
    %0 = vector.load %arg0[%c0, %c0_0] : memref<8x1xi32, #tpu.memory_space<vmem>>, vector<8x1xi32>
    %1 = tpu.iota {dimensions = array<i32: 1>} : vector<8x256xi32>
    %2 = vector.broadcast %0 : vector<8x1xi32> to vector<8x256xi32>
    %3 = arith.cmpi eq, %1, %2 : vector<8x256xi32>
    %cst = arith.constant 1.000000e+00 : f32
    %cst_1 = arith.constant 0.000000e+00 : f32
    %4 = vector.broadcast %cst : f32 to vector<8x256xf32>
    %5 = vector.broadcast %cst_1 : f32 to vector<8x256xf32>
    %6 = arith.select %3, %4, %5 : vector<8x256xi1>, vector<8x256xf32>
    %7 = arith.truncf %6 : vector<8x256xf32> to vector<8x256xbf16>
    %c0_2 = arith.constant 0 : index
    %c0_3 = arith.constant 0 : index
    %8 = vector.load %arg5[%c0_2, %c0_3] : memref<256x128xbf16, #tpu.memory_space<vmem>>, vector<256x128xbf16>
    %cst_4 = arith.constant dense<0.000000e+00> : vector<8x128xf32>
    %9 = tpu.matmul %7, %8, %cst_4 {dimension_numbers = #tpu.dot_dimension_numbers<[1], [0], [0], [1], [0, 0, 1, 1], [], []>} : vector<8x256xbf16>, vector<256x128xbf16>, vector<8x128xf32> -> vector<8x128xf32>
    %c0_5 = arith.constant 0 : index
    %c0_6 = arith.constant 0 : index
    %10 = vector.load %arg1[%c0_5, %c0_6] : memref<8x128xf32, #tpu.memory_space<vmem>>, vector<8x128xf32>
    %11 = arith.mulf %9, %9 : vector<8x128xf32>
    %cst_7 = arith.constant dense<0.000000e+00> : vector<8xf32>
    %12 = vector.multi_reduction <add>, %11, %cst_7 [1] : vector<8x128xf32> to vector<8xf32>
    %13 = vector.shape_cast %12 : vector<8xf32> to vector<8x1xf32>
    %cst_8 = arith.constant 1.280000e+02 : f32
    %14 = vector.broadcast %cst_8 : f32 to vector<8x1xf32>
    %15 = arith.divf %13, %14 : vector<8x1xf32>
    %cst_9 = arith.constant 9.99999997E-7 : f32
    %16 = vector.broadcast %cst_9 : f32 to vector<8x1xf32>
    %17 = arith.addf %15, %16 : vector<8x1xf32>
    %18 = math.rsqrt %17 : vector<8x1xf32>
    %19 = vector.broadcast %18 : vector<8x1xf32> to vector<8x128xf32>
    %20 = arith.mulf %9, %19 : vector<8x128xf32>
    %21 = arith.mulf %10, %10 : vector<8x128xf32>
    %cst_10 = arith.constant dense<0.000000e+00> : vector<8xf32>
    %22 = vector.multi_reduction <add>, %21, %cst_10 [1] : vector<8x128xf32> to vector<8xf32>
    %23 = vector.shape_cast %22 : vector<8xf32> to vector<8x1xf32>
    %cst_11 = arith.constant 1.280000e+02 : f32
    %24 = vector.broadcast %cst_11 : f32 to vector<8x1xf32>
    %25 = arith.divf %23, %24 : vector<8x1xf32>
    %cst_12 = arith.constant 9.99999997E-7 : f32
    %26 = vector.broadcast %cst_12 : f32 to vector<8x1xf32>
    %27 = arith.addf %25, %26 : vector<8x1xf32>
    %28 = math.rsqrt %27 : vector<8x1xf32>
    %29 = vector.broadcast %28 : vector<8x1xf32> to vector<8x128xf32>
    %30 = arith.mulf %10, %29 : vector<8x128xf32>
    %31 = tpu.concatenate %20, %30 in 1 : vector<8x128xf32>, vector<8x128xf32> -> vector<8x256xf32>
    %32 = arith.truncf %31 : vector<8x256xf32> to vector<8x256xbf16>
    %c0_13 = arith.constant 0 : index
    %c0_14 = arith.constant 0 : index
    %33 = vector.load %arg6[%c0_13, %c0_14] : memref<256x256xbf16, #tpu.memory_space<vmem>>, vector<256x256xbf16>
    %cst_15 = arith.constant dense<0.000000e+00> : vector<8x256xf32>
    %34 = tpu.matmul %32, %33, %cst_15 {dimension_numbers = #tpu.dot_dimension_numbers<[1], [0], [0], [1], [0, 0, 1, 1], [], []>} : vector<8x256xbf16>, vector<256x256xbf16>, vector<8x256xf32> -> vector<8x256xf32>
    %c0_16 = arith.constant 0 : index
    %c0_17 = arith.constant 0 : index
    %35 = vector.load %arg2[%c0_16, %c0_17] : memref<8x128xf32, #tpu.memory_space<vmem>>, vector<8x128xf32>
    %c0_18 = arith.constant 0 : index
    %c0_19 = arith.constant 0 : index
    %36 = vector.load %arg3[%c0_18, %c0_19] : memref<8x128xf32, #tpu.memory_space<vmem>>, vector<8x128xf32>
    %c0_20 = arith.constant 0 : index
    %c0_21 = arith.constant 0 : index
    %37 = vector.load %arg4[%c0_20, %c0_21] : memref<8x128xf32, #tpu.memory_space<vmem>>, vector<8x128xf32>
    %38 = vector.extract_strided_slice %34 {offsets = [0, 0], sizes = [8, 128], strides = [1, 1]} : vector<8x256xf32> to vector<8x128xf32>
    %39 = arith.mulf %38, %35 : vector<8x128xf32>
    %c112_i32 = arith.constant 112 : i32
    %40 = tpu.dynamic_rotate %38 by %c112_i32 dim 1 : vector<8x128xf32>, i32 -> vector<8x128xf32>
    %41 = arith.mulf %40, %36 : vector<8x128xf32>
    %42 = arith.addf %39, %41 : vector<8x128xf32>
    %c16_i32 = arith.constant 16 : i32
    %43 = tpu.dynamic_rotate %38 by %c16_i32 dim 1 : vector<8x128xf32>, i32 -> vector<8x128xf32>
    %44 = arith.mulf %43, %37 : vector<8x128xf32>
    %45 = arith.addf %42, %44 : vector<8x128xf32>
    %46 = arith.truncf %45 : vector<8x128xf32> to vector<8x128xbf16>
    %47 = vector.extract_strided_slice %34 {offsets = [0, 128], sizes = [8, 128], strides = [1, 1]} : vector<8x256xf32> to vector<8x128xf32>
    %48 = arith.mulf %47, %35 : vector<8x128xf32>
    %c112_i32_22 = arith.constant 112 : i32
    %49 = tpu.dynamic_rotate %47 by %c112_i32_22 dim 1 : vector<8x128xf32>, i32 -> vector<8x128xf32>
    %50 = arith.mulf %49, %36 : vector<8x128xf32>
    %51 = arith.addf %48, %50 : vector<8x128xf32>
    %c16_i32_23 = arith.constant 16 : i32
    %52 = tpu.dynamic_rotate %47 by %c16_i32_23 dim 1 : vector<8x128xf32>, i32 -> vector<8x128xf32>
    %53 = arith.mulf %52, %37 : vector<8x128xf32>
    %54 = arith.addf %51, %53 : vector<8x128xf32>
    %55 = vector.extract_strided_slice %54 {offsets = [0, 0], sizes = [8, 64], strides = [1, 1]} : vector<8x128xf32> to vector<8x64xf32>
    %56 = vector.extract_strided_slice %47 {offsets = [0, 64], sizes = [8, 64], strides = [1, 1]} : vector<8x128xf32> to vector<8x64xf32>
    %57 = arith.truncf %56 : vector<8x64xf32> to vector<8x64xbf16>
    %58 = tpu.transpose %55, [1, 0] : vector<8x64xf32> -> vector<64x8xf32>
    %59 = arith.truncf %58 : vector<64x8xf32> to vector<64x8xbf16>
    %60 = tpu.iota {dimensions = array<i32: 0>} : vector<8x8xi32>
    %61 = tpu.iota {dimensions = array<i32: 1>} : vector<8x8xi32>
    %62 = arith.cmpi sle, %61, %60 : vector<8x8xi32>
    %63 = vector.extract_strided_slice %46 {offsets = [0, 0], sizes = [8, 32], strides = [1, 1]} : vector<8x128xbf16> to vector<8x32xbf16>
    %64 = vector.extract_strided_slice %59 {offsets = [0, 0], sizes = [32, 8], strides = [1, 1]} : vector<64x8xbf16> to vector<32x8xbf16>
    %cst_24 = arith.constant dense<0.000000e+00> : vector<8x8xf32>
    %65 = tpu.matmul %63, %64, %cst_24 {dimension_numbers = #tpu.dot_dimension_numbers<[1], [0], [0], [1], [0, 0, 1, 1], [], []>} : vector<8x32xbf16>, vector<32x8xbf16>, vector<8x8xf32> -> vector<8x8xf32>
    %cst_25 = arith.constant -1.000000e+30 : f32
    %66 = vector.broadcast %cst_25 : f32 to vector<8x8xf32>
    %67 = arith.select %62, %65, %66 : vector<8x8xi1>, vector<8x8xf32>
    %cst_26 = arith.constant dense<0xFF800000> : vector<8xf32>
    %68 = vector.multi_reduction <maximumf>, %67, %cst_26 [1] : vector<8x8xf32> to vector<8xf32>
    %69 = vector.shape_cast %68 : vector<8xf32> to vector<8x1xf32>
    %70 = vector.broadcast %69 : vector<8x1xf32> to vector<8x8xf32>
    %71 = arith.subf %67, %70 : vector<8x8xf32>
    %72 = math.exp %71 : vector<8x8xf32>
    %cst_27 = arith.constant dense<0.000000e+00> : vector<8xf32>
    %73 = vector.multi_reduction <add>, %72, %cst_27 [1] : vector<8x8xf32> to vector<8xf32>
    %74 = vector.shape_cast %73 : vector<8xf32> to vector<8x1xf32>
    %75 = tpu.reciprocal %74 {approx = true} : vector<8x1xf32> -> vector<8x1xf32>
    %76 = vector.broadcast %75 : vector<8x1xf32> to vector<8x8xf32>
    %77 = arith.mulf %72, %76 : vector<8x8xf32>
    %78 = vector.extract_strided_slice %57 {offsets = [0, 0], sizes = [8, 32], strides = [1, 1]} : vector<8x64xbf16> to vector<8x32xbf16>
    %79 = arith.truncf %77 : vector<8x8xf32> to vector<8x8xbf16>
    %cst_28 = arith.constant dense<0.000000e+00> : vector<8x32xf32>
    %80 = tpu.matmul %79, %78, %cst_28 {dimension_numbers = #tpu.dot_dimension_numbers<[1], [0], [0], [1], [0, 0, 1, 1], [], []>} : vector<8x8xbf16>, vector<8x32xbf16>, vector<8x32xf32> -> vector<8x32xf32>
    %81 = vector.extract_strided_slice %46 {offsets = [0, 32], sizes = [8, 32], strides = [1, 1]} : vector<8x128xbf16> to vector<8x32xbf16>
    %82 = vector.extract_strided_slice %59 {offsets = [0, 0], sizes = [32, 8], strides = [1, 1]} : vector<64x8xbf16> to vector<32x8xbf16>
    %cst_29 = arith.constant dense<0.000000e+00> : vector<8x8xf32>
    %83 = tpu.matmul %81, %82, %cst_29 {dimension_numbers = #tpu.dot_dimension_numbers<[1], [0], [0], [1], [0, 0, 1, 1], [], []>} : vector<8x32xbf16>, vector<32x8xbf16>, vector<8x8xf32> -> vector<8x8xf32>
    %cst_30 = arith.constant -1.000000e+30 : f32
    %84 = vector.broadcast %cst_30 : f32 to vector<8x8xf32>
    %85 = arith.select %62, %83, %84 : vector<8x8xi1>, vector<8x8xf32>
    %cst_31 = arith.constant dense<0xFF800000> : vector<8xf32>
    %86 = vector.multi_reduction <maximumf>, %85, %cst_31 [1] : vector<8x8xf32> to vector<8xf32>
    %87 = vector.shape_cast %86 : vector<8xf32> to vector<8x1xf32>
    %88 = vector.broadcast %87 : vector<8x1xf32> to vector<8x8xf32>
    %89 = arith.subf %85, %88 : vector<8x8xf32>
    %90 = math.exp %89 : vector<8x8xf32>
    %cst_32 = arith.constant dense<0.000000e+00> : vector<8xf32>
    %91 = vector.multi_reduction <add>, %90, %cst_32 [1] : vector<8x8xf32> to vector<8xf32>
    %92 = vector.shape_cast %91 : vector<8xf32> to vector<8x1xf32>
    %93 = tpu.reciprocal %92 {approx = true} : vector<8x1xf32> -> vector<8x1xf32>
    %94 = vector.broadcast %93 : vector<8x1xf32> to vector<8x8xf32>
    %95 = arith.mulf %90, %94 : vector<8x8xf32>
    %96 = vector.extract_strided_slice %57 {offsets = [0, 0], sizes = [8, 32], strides = [1, 1]} : vector<8x64xbf16> to vector<8x32xbf16>
    %97 = arith.truncf %95 : vector<8x8xf32> to vector<8x8xbf16>
    %cst_33 = arith.constant dense<0.000000e+00> : vector<8x32xf32>
    %98 = tpu.matmul %97, %96, %cst_33 {dimension_numbers = #tpu.dot_dimension_numbers<[1], [0], [0], [1], [0, 0, 1, 1], [], []>} : vector<8x8xbf16>, vector<8x32xbf16>, vector<8x32xf32> -> vector<8x32xf32>
    %99 = vector.extract_strided_slice %46 {offsets = [0, 64], sizes = [8, 32], strides = [1, 1]} : vector<8x128xbf16> to vector<8x32xbf16>
    %100 = vector.extract_strided_slice %59 {offsets = [32, 0], sizes = [32, 8], strides = [1, 1]} : vector<64x8xbf16> to vector<32x8xbf16>
    %cst_34 = arith.constant dense<0.000000e+00> : vector<8x8xf32>
    %101 = tpu.matmul %99, %100, %cst_34 {dimension_numbers = #tpu.dot_dimension_numbers<[1], [0], [0], [1], [0, 0, 1, 1], [], []>} : vector<8x32xbf16>, vector<32x8xbf16>, vector<8x8xf32> -> vector<8x8xf32>
    %cst_35 = arith.constant -1.000000e+30 : f32
    %102 = vector.broadcast %cst_35 : f32 to vector<8x8xf32>
    %103 = arith.select %62, %101, %102 : vector<8x8xi1>, vector<8x8xf32>
    %cst_36 = arith.constant dense<0xFF800000> : vector<8xf32>
    %104 = vector.multi_reduction <maximumf>, %103, %cst_36 [1] : vector<8x8xf32> to vector<8xf32>
    %105 = vector.shape_cast %104 : vector<8xf32> to vector<8x1xf32>
    %106 = vector.broadcast %105 : vector<8x1xf32> to vector<8x8xf32>
    %107 = arith.subf %103, %106 : vector<8x8xf32>
    %108 = math.exp %107 : vector<8x8xf32>
    %cst_37 = arith.constant dense<0.000000e+00> : vector<8xf32>
    %109 = vector.multi_reduction <add>, %108, %cst_37 [1] : vector<8x8xf32> to vector<8xf32>
    %110 = vector.shape_cast %109 : vector<8xf32> to vector<8x1xf32>
    %111 = tpu.reciprocal %110 {approx = true} : vector<8x1xf32> -> vector<8x1xf32>
    %112 = vector.broadcast %111 : vector<8x1xf32> to vector<8x8xf32>
    %113 = arith.mulf %108, %112 : vector<8x8xf32>
    %114 = vector.extract_strided_slice %57 {offsets = [0, 32], sizes = [8, 32], strides = [1, 1]} : vector<8x64xbf16> to vector<8x32xbf16>
    %115 = arith.truncf %113 : vector<8x8xf32> to vector<8x8xbf16>
    %cst_38 = arith.constant dense<0.000000e+00> : vector<8x32xf32>
    %116 = tpu.matmul %115, %114, %cst_38 {dimension_numbers = #tpu.dot_dimension_numbers<[1], [0], [0], [1], [0, 0, 1, 1], [], []>} : vector<8x8xbf16>, vector<8x32xbf16>, vector<8x32xf32> -> vector<8x32xf32>
    %117 = vector.extract_strided_slice %46 {offsets = [0, 96], sizes = [8, 32], strides = [1, 1]} : vector<8x128xbf16> to vector<8x32xbf16>
    %118 = vector.extract_strided_slice %59 {offsets = [32, 0], sizes = [32, 8], strides = [1, 1]} : vector<64x8xbf16> to vector<32x8xbf16>
    %cst_39 = arith.constant dense<0.000000e+00> : vector<8x8xf32>
    %119 = tpu.matmul %117, %118, %cst_39 {dimension_numbers = #tpu.dot_dimension_numbers<[1], [0], [0], [1], [0, 0, 1, 1], [], []>} : vector<8x32xbf16>, vector<32x8xbf16>, vector<8x8xf32> -> vector<8x8xf32>
    %cst_40 = arith.constant -1.000000e+30 : f32
    %120 = vector.broadcast %cst_40 : f32 to vector<8x8xf32>
    %121 = arith.select %62, %119, %120 : vector<8x8xi1>, vector<8x8xf32>
    %cst_41 = arith.constant dense<0xFF800000> : vector<8xf32>
    %122 = vector.multi_reduction <maximumf>, %121, %cst_41 [1] : vector<8x8xf32> to vector<8xf32>
    %123 = vector.shape_cast %122 : vector<8xf32> to vector<8x1xf32>
    %124 = vector.broadcast %123 : vector<8x1xf32> to vector<8x8xf32>
    %125 = arith.subf %121, %124 : vector<8x8xf32>
    %126 = math.exp %125 : vector<8x8xf32>
    %cst_42 = arith.constant dense<0.000000e+00> : vector<8xf32>
    %127 = vector.multi_reduction <add>, %126, %cst_42 [1] : vector<8x8xf32> to vector<8xf32>
    %128 = vector.shape_cast %127 : vector<8xf32> to vector<8x1xf32>
    %129 = tpu.reciprocal %128 {approx = true} : vector<8x1xf32> -> vector<8x1xf32>
    %130 = vector.broadcast %129 : vector<8x1xf32> to vector<8x8xf32>
    %131 = arith.mulf %126, %130 : vector<8x8xf32>
    %132 = vector.extract_strided_slice %57 {offsets = [0, 32], sizes = [8, 32], strides = [1, 1]} : vector<8x64xbf16> to vector<8x32xbf16>
    %133 = arith.truncf %131 : vector<8x8xf32> to vector<8x8xbf16>
    %cst_43 = arith.constant dense<0.000000e+00> : vector<8x32xf32>
    %134 = tpu.matmul %133, %132, %cst_43 {dimension_numbers = #tpu.dot_dimension_numbers<[1], [0], [0], [1], [0, 0, 1, 1], [], []>} : vector<8x8xbf16>, vector<8x32xbf16>, vector<8x32xf32> -> vector<8x32xf32>
    %135 = tpu.concatenate %80, %98, %116, %134 in 1 : vector<8x32xf32>, vector<8x32xf32>, vector<8x32xf32>, vector<8x32xf32> -> vector<8x128xf32>
    %136 = arith.truncf %135 : vector<8x128xf32> to vector<8x128xbf16>
    %c0_44 = arith.constant 0 : index
    %c0_45 = arith.constant 0 : index
    %137 = vector.load %arg7[%c0_44, %c0_45] : memref<128x128xbf16, #tpu.memory_space<vmem>>, vector<128x128xbf16>
    %cst_46 = arith.constant dense<0.000000e+00> : vector<8x128xf32>
    %138 = tpu.matmul %136, %137, %cst_46 {dimension_numbers = #tpu.dot_dimension_numbers<[1], [0], [0], [1], [0, 0, 1, 1], [], []>} : vector<8x128xbf16>, vector<128x128xbf16>, vector<8x128xf32> -> vector<8x128xf32>
    %139 = arith.addf %138, %10 : vector<8x128xf32>
    %140 = arith.mulf %139, %139 : vector<8x128xf32>
    %cst_47 = arith.constant dense<0.000000e+00> : vector<8xf32>
    %141 = vector.multi_reduction <add>, %140, %cst_47 [1] : vector<8x128xf32> to vector<8xf32>
    %142 = vector.shape_cast %141 : vector<8xf32> to vector<8x1xf32>
    %cst_48 = arith.constant 1.280000e+02 : f32
    %143 = vector.broadcast %cst_48 : f32 to vector<8x1xf32>
    %144 = arith.divf %142, %143 : vector<8x1xf32>
    %cst_49 = arith.constant 9.99999997E-7 : f32
    %145 = vector.broadcast %cst_49 : f32 to vector<8x1xf32>
    %146 = arith.addf %144, %145 : vector<8x1xf32>
    %147 = math.rsqrt %146 : vector<8x1xf32>
    %148 = vector.broadcast %147 : vector<8x1xf32> to vector<8x128xf32>
    %149 = arith.mulf %139, %148 : vector<8x128xf32>
    %150 = arith.truncf %149 : vector<8x128xf32> to vector<8x128xbf16>
    %c0_50 = arith.constant 0 : index
    %c0_51 = arith.constant 0 : index
    %151 = vector.load %arg8[%c0_50, %c0_51] : memref<128x512xbf16, #tpu.memory_space<vmem>>, vector<128x512xbf16>
    %cst_52 = arith.constant dense<0.000000e+00> : vector<8x512xf32>
    %152 = tpu.matmul %150, %151, %cst_52 {dimension_numbers = #tpu.dot_dimension_numbers<[1], [0], [0], [1], [0, 0, 1, 1], [], []>} : vector<8x128xbf16>, vector<128x512xbf16>, vector<8x512xf32> -> vector<8x512xf32>
    %153 = vector.extract_strided_slice %152 {offsets = [0, 0], sizes = [8, 256], strides = [1, 1]} : vector<8x512xf32> to vector<8x256xf32>
    %154 = vector.extract_strided_slice %152 {offsets = [0, 256], sizes = [8, 256], strides = [1, 1]} : vector<8x512xf32> to vector<8x256xf32>
    %155 = arith.negf %153 : vector<8x256xf32>
    %156 = math.exp %155 : vector<8x256xf32>
    %cst_53 = arith.constant 1.000000e+00 : f32
    %157 = vector.broadcast %cst_53 : f32 to vector<8x256xf32>
    %158 = arith.addf %157, %156 : vector<8x256xf32>
    %159 = arith.divf %157, %158 : vector<8x256xf32>
    %160 = arith.mulf %153, %159 : vector<8x256xf32>
    %161 = arith.mulf %160, %154 : vector<8x256xf32>
    %162 = arith.truncf %161 : vector<8x256xf32> to vector<8x256xbf16>
    %c0_54 = arith.constant 0 : index
    %c0_55 = arith.constant 0 : index
    %163 = vector.load %arg9[%c0_54, %c0_55] : memref<256x128xbf16, #tpu.memory_space<vmem>>, vector<256x128xbf16>
    %cst_56 = arith.constant dense<0.000000e+00> : vector<8x128xf32>
    %164 = tpu.matmul %162, %163, %cst_56 {dimension_numbers = #tpu.dot_dimension_numbers<[1], [0], [0], [1], [0, 0, 1, 1], [], []>} : vector<8x256xbf16>, vector<256x128xbf16>, vector<8x128xf32> -> vector<8x128xf32>
    %165 = arith.addf %164, %139 : vector<8x128xf32>
    %c0_57 = arith.constant 0 : index
    %c0_58 = arith.constant 0 : index
    %166 = vector.load %arg12[%c0_57, %c0_58] : memref<8x128xf32, #tpu.memory_space<vmem>>, vector<8x128xf32>
    tpu.vector_store %arg12[%c0_57, %c0_58], %165 {strides = array<i32>} : memref<8x128xf32, #tpu.memory_space<vmem>>, vector<8x128xf32>,
    %167 = arith.mulf %165, %165 : vector<8x128xf32>
    %cst_59 = arith.constant dense<0.000000e+00> : vector<8xf32>
    %168 = vector.multi_reduction <add>, %167, %cst_59 [1] : vector<8x128xf32> to vector<8xf32>
    %169 = vector.shape_cast %168 : vector<8xf32> to vector<8x1xf32>
    %cst_60 = arith.constant 1.280000e+02 : f32
    %170 = vector.broadcast %cst_60 : f32 to vector<8x1xf32>
    %171 = arith.divf %169, %170 : vector<8x1xf32>
    %cst_61 = arith.constant 9.99999997E-7 : f32
    %172 = vector.broadcast %cst_61 : f32 to vector<8x1xf32>
    %173 = arith.addf %171, %172 : vector<8x1xf32>
    %174 = math.rsqrt %173 : vector<8x1xf32>
    %175 = vector.broadcast %174 : vector<8x1xf32> to vector<8x128xf32>
    %176 = arith.mulf %165, %175 : vector<8x128xf32>
    %c0_62 = arith.constant 0 : index
    %c0_63 = arith.constant 0 : index
    %177 = vector.load %arg10[%c0_62, %c0_63] : memref<1x128xf32, #tpu.memory_space<vmem>>, vector<1x128xf32>
    %178 = vector.broadcast %177 : vector<1x128xf32> to vector<8x128xf32>
    %179 = arith.mulf %176, %178 : vector<8x128xf32>
    %c0_64 = arith.constant 0 : index
    %c0_65 = arith.constant 0 : index
    %180 = vector.load %arg11[%c0_64, %c0_65] : memref<8x128xf32, #tpu.memory_space<vmem>>, vector<8x128xf32>
    tpu.vector_store %arg11[%c0_64, %c0_65], %179 {strides = array<i32>} : memref<8x128xf32, #tpu.memory_space<vmem>>, vector<8x128xf32>,
    return
  }
}

</mosaic_0001>

<bundles_post_ra>
// kernel: tile.19
= control target key start
LH: loop header
LB: loop body
LE: loop exit
PB: predicated region body
PF: predicated region fallthrough
CT: control target
= control target key end

     0   :  { %vm42_vm0 = vcmask 1047556   ;;  %vm44_vm1 = vcmask 261120   ;;  %s93_s22 = smov 32   ;;  %s94_s25 = smov 64   ;;  %vm54_vm2 = vcmask 1048320   ;;  %vm64_vm3 = vcmask 785920   ;;  %s146_s0 = inlined_call_operand.vmem [shape: f32[8,4,32], index: 0, kind: input, shape index: {}]   ;;  %s147_s1 = inlined_call_operand.vmem [shape: f32[8,128], index: 1, kind: output, shape index: {}]  }
   0x1   :  { %v82_v0 = vld [vmem:[%s146_s0 + $0x1c] sm:$0xf]  ;;  %v83_v1 = vld [vmem:[%s146_s0 + $0x18] sm:$0xf]  ;;  %v84_v2 = vld [vmem:[%s146_s0 + $0x14] sm:$0xf] }
   0x2   :  { %8 = vst [vmem:[#allocation0 + $0x38] sm:$0xf] %v82_v0  ;;  %13 = vst [vmem:[#allocation0 + $0x30] sm:$0xf] %v83_v1  ;;  %v85_v3 = vld [vmem:[%s146_s0 + $0x10] sm:$0xf] }
   0x3   :  { %18 = vst [vmem:[#allocation0 + $0x28] sm:$0xf] %v84_v2  ;;  %v86_v4 = vld [vmem:[%s146_s0 + $0xc] sm:$0xf]  ;;  %v87_v5 = vld [vmem:[%s146_s0 + $0x8] sm:$0xf] }
   0x4   :  { %23 = vst [vmem:[#allocation0 + $0x20] sm:$0xf] %v85_v3  ;;  %28 = vst [vmem:[#allocation0 + $0x18] sm:$0xf] %v86_v4  ;;  %v88_v6 = vld [vmem:[%s146_s0 + $0x4] sm:$0xf] }
   0x5   :  { %33 = vst [vmem:[#allocation0 + $0x10] sm:$0xf] %v87_v5  ;;  %v38_v7 = vld [vmem:[%s146_s0] sm:$0xf]  ;;  %37 = vst [vmem:[#allocation0 + $0x8] sm:$0xf] %v88_v6 }
   0x6   :  { %39 = vst [vmem:[#allocation0] sm:$0xf] %v38_v7  ;;  %s92_s0 = smov 96   ;;  %vm74_vm4 = vcmask 523520  }
   0xb   :  { %v49_v8 = vld [vmem:[#allocation0 + $0x3] ss:$8 sm:$0xf0]   ;;  %v59_v9 = vld [vmem:[#allocation0 + $0x2] ss:$8 sm:$0xf0]  }
   0xc   :  { %v69_v14 = vld [vmem:[#allocation0 + $0x1] ss:$8 sm:$0xf0]   ;;  %v41_v17 = vld [vmem:[#allocation0] ss:$8 sm:$0xf0]  }
   0xd   :  { %v47_v10 = vld [vmem:[#allocation0 + $0x3] ss:$8 sm:$0xf]   ;;  %v57_v11 = vld [vmem:[#allocation0 + $0x2] ss:$8 sm:$0xf]  }
   0xe   :  { %v51_v12 = vsel %vm42_vm0, %v49_v8, %v47_v10  ;;  %v67_v13 = vld [vmem:[#allocation0 + $0x1] ss:$8 sm:$0xf]   ;;  %v40_v16 = vld [vmem:[#allocation0] ss:$8 sm:$0xf]   ;;  %v61_v18 = vsel %vm42_vm0, %v59_v9, %v57_v11 }
   0xf   :  { %52 = vrot.lane.b32.xlu0 %v51_v12, %s92_s0  ;;  %v71_v15 = vsel %vm42_vm0, %v69_v14, %v67_v13  ;;  %v43_v19 = vsel %vm42_vm0, %v41_v17, %v40_v16 }
  0x10   :  { %72 = vrot.lane.b32.xlu1 %v71_v15, %s93_s22  ;;  %45 = vst.msk [vmem:[%s147_s1] sm:$0xff] %vm44_vm1, %v43_v19  }
  0x13   :  { %62 = vrot.lane.b32.xlu0 %v61_v18, %s94_s25 }
  0x81   :  { %v53_v20 = vpop.permute.xlu0 %52  }
  0x82   :  { %55 = vst.msk [vmem:[%s147_s1] sm:$0xff] %vm54_vm2, %v53_v20   ;;  %v73_v21 = vpop.permute.xlu1 %72  }
  0x85   :  { %v63_v22 = vpop.permute.xlu0 %62  }
  0x86   :  { %65 = vst.msk [vmem:[%s147_s1] sm:$0xff] %vm64_vm3, %v63_v22  }
  0x87   :  { %75 = vst.msk [vmem:[%s147_s1] sm:$0xff] %vm74_vm4, %v73_v21  }

// kernel: llama_model_forward.1
= control target key start
LH: loop header
LB: loop body
LE: loop exit
PB: predicated region body
PF: predicated region fallthrough
CT: control target
= control target key end

     0   :  { %18 = vsyncpa [#allocation3], 0  ;;  %v2085_v1 = vmov 0   ;;  %s2624_s0 = inlined_call_operand.vmem [shape: s32[8,1], index: 0, kind: input, shape index: {}]   ;;  %s2625_s1 = inlined_call_operand.vmem [shape: f32[8,128], index: 1, kind: input, shape index: {}]   ;;  %s2626_s2 = inlined_call_operand.vmem [shape: f32[8,128], index: 2, kind: input, shape index: {}]   ;;  %s2627_s3 = inlined_call_operand.vmem [shape: f32[8,128], index: 3, kind: input, shape index: {}]   ;;  %s2628_s4 = inlined_call_operand.vmem [shape: f32[8,128], index: 4, kind: input, shape index: {}]   ;;  %s2629_s5 = inlined_call_operand.vmem [shape: bf16[256,128], index: 5, kind: input, shape index: {}]   ;;  %s2630_s6 = inlined_call_operand.vmem [shape: bf16[256,256], index: 6, kind: input, shape index: {}]   ;;  %s2631_s7 = inlined_call_operand.vmem [shape: bf16[128,128], index: 7, kind: input, shape index: {}]   ;;  %s2632_s8 = inlined_call_operand.vmem [shape: bf16[128,512], index: 8, kind: input, shape index: {}]   ;;  %s2633_s9 = inlined_call_operand.vmem [shape: bf16[256,128], index: 9, kind: input, shape index: {}]   ;;  %s2634_s10 = inlined_call_operand.vmem [shape: f32[1,128], index: 10, kind: input, shape index: {}]   ;;  %s2635_s11 = inlined_call_operand.hbm [shape: f32[8,128], index: 11, kind: output, shape index: {0}]   ;;  %s2636_s12 = inlined_call_operand.hbm [shape: f32[8,128], index: 12, kind: output, shape index: {1}]  }
   0x1   :  { %v43_v0 = vld [vmem:[%s2624_s0] sm:$0xff]  ;;  %1868 = vset.pattern.permute.xlu0 %v2085_v1  ;;  %v1871_v4 = vld [vmem:[%s2629_s5 + $0x48] sm:$0xff]   ;;  %v1873_v6 = vld [vmem:[%s2629_s5 + $0x50] sm:$0xff]  }
   0x2   :  { %v1869_v2 = vld [vmem:[%s2629_s5 + $0x40] sm:$0xff]   ;;  %48 = vperm.xlu0 %1868, %v43_v0   ;;  %v1872_v5 = vld [vmem:[%s2629_s5 + $0x8] sm:$0xff]   ;;  %v1874_v7 = vld [vmem:[%s2629_s5 + $0x10] sm:$0xff]  }
   0x3   :  { %v1870_v3 = vld [vmem:[%s2629_s5] sm:$0xff]   ;;  %1708 = vmatprep.subr.bf16.mxu0 %v1869_v2  ;;  %v1875_v8 = vld [vmem:[%s2629_s5 + $0x58] sm:$0xff]   ;;  %v1879_v12 = vld [vmem:[%s2629_s5 + $0x68] sm:$0xff]  }
   0x4   :  { %1709 = vmatpush3.bf16.msra.mxu0 %v1870_v3  ;;  %v1876_v9 = vld [vmem:[%s2629_s5 + $0x18] sm:$0xff]   ;;  %v1877_v10 = vld [vmem:[%s2629_s5 + $0x60] sm:$0xff]   ;;  %v1880_v13 = vld [vmem:[%s2629_s5 + $0x28] sm:$0xff]  }
   0x5   :  { %1710 = vmatprep.subr.bf16.mxu0 %v1871_v4  ;;  %v1878_v11 = vld [vmem:[%s2629_s5 + $0x20] sm:$0xff]   ;;  %v1881_v14 = vld [vmem:[%s2629_s5 + $0x70] sm:$0xff]   ;;  %v1883_v16 = vld [vmem:[%s2629_s5 + $0x78] sm:$0xff]  }
   0x6   :  { %v1882_v15 = vld [vmem:[%s2629_s5 + $0x30] sm:$0xff]   ;;  %v1884_v17 = vld [vmem:[%s2629_s5 + $0x38] sm:$0xff]  }
   0x8   :  { %1711 = vmatpush3.bf16.msra.mxu0 %v1872_v5 }
   0x9   :  { %1712 = vmatprep.subr.bf16.mxu0 %v1873_v6 }
   0xc   :  { %1713 = vmatpush3.bf16.msra.mxu0 %v1874_v7 }
   0xd   :  { %1714 = vmatprep.subr.bf16.mxu0 %v1875_v8 }
  0x10   :  { %1715 = vmatpush3.bf16.msra.mxu0 %v1876_v9 }
  0x11   :  { %1716 = vmatprep.subr.bf16.mxu0 %v1877_v10 }
  0x14   :  { %1717 = vmatpush3.bf16.msra.mxu0 %v1878_v11 }
  0x15   :  { %1718 = vmatprep.subr.bf16.mxu0 %v1879_v12 }
  0x18   :  { %1719 = vmatpush3.bf16.msra.mxu0 %v1880_v13 }
  0x19   :  { %1720 = vmatprep.subr.bf16.mxu0 %v1881_v14 }
  0x1c   :  { %1721 = vmatpush3.bf16.msra.mxu0 %v1882_v15 }
  0x1d   :  { %1722 = vmatprep.subr.bf16.mxu0 %v1883_v16 }
  0x20   :  { %1723 = vmatpush3.bf16.msra.mxu0 %v1884_v17 }
  0x21   :  { %19 = vsyncpa [#allocation5], 0  ;;  %v44_v18 = vlaneseq  ;;  %v2086_v22 = vmov 1.0|1.0   ;;  %v2221_v23 = vld [vmem:[%s2625_s1] sm:$0xff]  ;;  %s2088_s21 = smov 16  }
  0x22   :  { %v233_v24 = vmul.f32 %v2221_v23, %v2221_v23  ;;  %v1885_v25 = vld [vmem:[%s2630_s6 + $0x4] ss:$8 sps:$4 sm:$0xff]   ;;  %v1887_v26 = vld [vmem:[%s2630_s6] ss:$8 sps:$4 sm:$0xff]   ;;  %v1888_v27 = vld [vmem:[%s2630_s6 + $0x14] ss:$8 sps:$4 sm:$0xff]  }
  0x23   :  { %v2214_v19 = vand.u32 127, %v44_v18  ;;  %434 = vmatprep.subr.bf16.mxu1 %v1885_v25  ;;  %v1890_v28 = vld [vmem:[%s2630_s6 + $0x10] ss:$8 sps:$4 sm:$0xff]   ;;  %v1891_v29 = vld [vmem:[%s2630_s6 + $0x24] ss:$8 sps:$4 sm:$0xff]   ;;  %vm2090_vm4 = vmmov 0  }
  0x24   :  { %234 = vadd.xlane.f32.xlu0 %v233_v24  ;;  %435 = vmatpush1.bf16.msra.mxu1 %v1887_v26  ;;  %v1893_v30 = vld [vmem:[%s2630_s6 + $0x20] ss:$8 sps:$4 sm:$0xff]   ;;  %v1894_v31 = vld [vmem:[%s2630_s6 + $0x34] ss:$8 sps:$4 sm:$0xff]   ;;  %v1896_v32 = vld [vmem:[%s2630_s6 + $0x30] ss:$8 sps:$4 sm:$0xff]  }
  0x25   :  { %v46_v20 = vadd.s32 128, %v2214_v19  ;;  %436 = vmatprep.subr.bf16.mxu1 %v1888_v27  ;;  %v1897_v33 = vld [vmem:[%s2630_s6 + $0x44] ss:$8 sps:$4 sm:$0xff]   ;;  %v1899_v34 = vld [vmem:[%s2630_s6 + $0x40] ss:$8 sps:$4 sm:$0xff]   ;;  %vm537_vm5 = vcmask 261120  }
  0x26   :  { %v1900_v35 = vld [vmem:[%s2630_s6 + $0x54] ss:$8 sps:$4 sm:$0xff]   ;;  %v1902_v36 = vld [vmem:[%s2630_s6 + $0x50] ss:$8 sps:$4 sm:$0xff]   ;;  %v1903_v37 = vld [vmem:[%s2630_s6 + $0x64] ss:$8 sps:$4 sm:$0xff]  }
  0x27   :  { %v1905_v38 = vld [vmem:[%s2630_s6 + $0x60] ss:$8 sps:$4 sm:$0xff]   ;;  %v1906_v39 = vld [vmem:[%s2630_s6 + $0x74] ss:$8 sps:$4 sm:$0xff]   ;;  %v1908_v40 = vld [vmem:[%s2630_s6 + $0x70] ss:$8 sps:$4 sm:$0xff]  }
  0x28   :  { %437 = vmatpush1.bf16.msra.mxu1 %v1890_v28  ;;  %v1909_v41 = vld [vmem:[%s2630_s6 + $0x84] ss:$8 sps:$4 sm:$0xff]   ;;  %v1911_v42 = vld [vmem:[%s2630_s6 + $0x80] ss:$8 sps:$4 sm:$0xff]   ;;  %v1912_v43 = vld [vmem:[%s2630_s6 + $0x94] ss:$8 sps:$4 sm:$0xff]  }
  0x29   :  { %438 = vmatprep.subr.bf16.mxu1 %v1891_v29  ;;  %v1914_v44 = vld [vmem:[%s2630_s6 + $0x90] ss:$8 sps:$4 sm:$0xff]   ;;  %v1915_v45 = vld [vmem:[%s2630_s6 + $0xa4] ss:$8 sps:$4 sm:$0xff]   ;;  %v1917_v46 = vld [vmem:[%s2630_s6 + $0xa0] ss:$8 sps:$4 sm:$0xff]  }
  0x2a   :  { %v1918_v47 = vld [vmem:[%s2630_s6 + $0xb4] ss:$8 sps:$4 sm:$0xff]   ;;  %v1920_v55 = vld [vmem:[%s2630_s6 + $0xb0] ss:$8 sps:$4 sm:$0xff]   ;;  %v1921_v58 = vld [vmem:[%s2630_s6 + $0xc4] ss:$8 sps:$4 sm:$0xff]  }
  0x2b   :  { %v1923_v59 = vld [vmem:[%s2630_s6 + $0xc0] ss:$8 sps:$4 sm:$0xff]   ;;  %v1924_v60 = vld [vmem:[%s2630_s6 + $0xd4] ss:$8 sps:$4 sm:$0xff]   ;;  %v1926_v61 = vld [vmem:[%s2630_s6 + $0xd0] ss:$8 sps:$4 sm:$0xff]  }
  0x2c   :  { %439 = vmatpush1.bf16.msra.mxu1 %v1893_v30  ;;  %v1927_v62 = vld [vmem:[%s2630_s6 + $0xe4] ss:$8 sps:$4 sm:$0xff]   ;;  %v1929_v63 = vld [vmem:[%s2630_s6 + $0xe0] ss:$8 sps:$4 sm:$0xff]   ;;  %v1930_v0 = vld [vmem:[%s2630_s6 + $0xf4] ss:$8 sps:$4 sm:$0xff]  }
  0x2d   :  { %440 = vmatprep.subr.bf16.mxu1 %v1894_v31  ;;  %v1932_v2 = vld [vmem:[%s2630_s6 + $0xf0] ss:$8 sps:$4 sm:$0xff]   ;;  %v475_v12 = vld [vmem:[%s2626_s2] sm:$0xff]  ;;  %s2087_s6 = smov 112   ;;  %vm582_vm7 = vcmask 64512   ;;  %s2091_s2 = smov 64  }
  0x2e   :  { %v477_v24 = vld [vmem:[%s2628_s4] sm:$0xff]  ;;  %vm601_vm8 = vcmask 1043456   ;;  %s2093_s4 = smov 32   ;;  %vm967_vm9 = vcmask 523264   ;;  %vm969_vm10 = vcmask 785408  }
  0x30   :  { %441 = vmatpush1.bf16.msra.mxu1 %v1896_v32 }
  0x31   :  { %442 = vmatprep.subr.bf16.mxu1 %v1897_v33 }
  0x34   :  { %443 = vmatpush1.bf16.msra.mxu1 %v1899_v34 }
  0x35   :  { %444 = vmatprep.subr.bf16.mxu1 %v1900_v35 }
  0x38   :  { %445 = vmatpush1.bf16.msra.mxu1 %v1902_v36  ;;  %v2089_v36 = vmov 0.0  }
  0x39   :  { %446 = vmatprep.subr.bf16.mxu1 %v1903_v37  ;;  %1781 = vmatprep.subr.bf16.mxu0 %v2089_v36 }
  0x3c   :  { %447 = vmatpush1.bf16.msra.mxu1 %v1905_v38 }
  0x3d   :  { %448 = vmatprep.subr.bf16.mxu1 %v1906_v39 }
  0x40   :  { %449 = vmatpush1.bf16.msra.mxu1 %v1908_v40 }
  0x41   :  { %450 = vmatprep.subr.bf16.mxu1 %v1909_v41 }
  0x44   :  { %451 = vmatpush1.bf16.msra.mxu1 %v1911_v42 }
  0x45   :  { %452 = vmatprep.subr.bf16.mxu1 %v1912_v43 }
  0x48   :  { %453 = vmatpush1.bf16.msra.mxu1 %v1914_v44  ;;  %v2343_v44 = vshrl.u32 %v44_v18, 7 }
  0x49   :  { %454 = vmatprep.subr.bf16.mxu1 %v1915_v45 }
  0x4a   :  { %vm536_vm6 = vcmp.le.s32.totalorder %v2214_v19, %v2343_v44 }
  0x4c   :  { %455 = vmatpush1.bf16.msra.mxu1 %v1917_v46 }
  0x4d   :  { %456 = vmatprep.subr.bf16.mxu1 %v1918_v47 }
  0x50   :  { %457 = vmatpush1.bf16.msra.mxu1 %v1920_v55 }
  0x51   :  { %458 = vmatprep.subr.bf16.mxu1 %v1921_v58 }
  0x54   :  { %459 = vmatpush1.bf16.msra.mxu1 %v1923_v59 }
  0x55   :  { %460 = vmatprep.subr.bf16.mxu1 %v1924_v60 }
  0x58   :  { %461 = vmatpush1.bf16.msra.mxu1 %v1926_v61 }
  0x59   :  { %462 = vmatprep.subr.bf16.mxu1 %v1927_v62 }
  0x5c   :  { %463 = vmatpush1.bf16.msra.mxu1 %v1929_v63 }
  0x5d   :  { %464 = vmatprep.subr.bf16.mxu1 %v1930_v0 }
  0x60   :  { %465 = vmatpush1.bf16.msra.mxu1 %v1932_v2 }
  0x61   :  { %1817 = vmatprep.subr.bf16.mxu1 %v2089_v36 }
  0x81   :  { %v49_v21 = vpop.permute.xlu0 %48 }
  0x82   :  { %vm50_vm0 = vcmp.eq.s32.totalorder %v2214_v19, %v49_v21  ;;  %vm51_vm1 = vcmp.eq.s32.totalorder %v46_v20, %v49_v21  ;;  %v476_v20 = vld [vmem:[%s2627_s3] sm:$0xff]  ;;  %s2092_s3 = smov 96  }
  0x83   :  { %vm1607_vm2 = vmpackc.low %vm50_vm0, %vm50_vm0 }
  0x84   :  { %vm1605_vm3 = vmpackc.low %vm51_vm1, %vm51_vm1 }
  0x85   :  { %1606 = vmatprep.mubr.msk.bf16.mxu0 %vm1605_vm3, %v2086_v22 }
  0x86   :  { %1608 = vmatmul.mubr.msk.bf16.vlgmr.msra.gmra.mrb[0].mxu0 %vm1607_vm2, %v2086_v22 }
  0x87   :  { %1785 = vmatprep.mubr.msk.bf16.mxu0 %vm2090_vm4, %v2089_v36 }
  0xb1   :  { %v235_v54 = vpop.xlane.xlu0 %234 }
  0xb2   :  { %v236_v56 = vmul.f32 0.0078125, %v235_v54 }
  0xb4   :  { %v237_v57 = vadd.f32 1e-06, %v236_v56 }
  0xb6   :  { %2005 = vrsqrt.f32 %v237_v57 }
  0xc0   :  { %v2006_v3 = vpop.eup %2005 }
  0xc1   :  { %v239_v4 = vmul.f32 %v2006_v3, %v2221_v23 }
  0xc3   :  { %v241_v5 = vpack.c.bf16 %v239_v4, %v239_v4 }
  0xc5   :  { %466 = vmatprep.mubr.bf16.mxu1 %v241_v5 }
 0x159   :  { %v1724_v48 = vpop.f32.mrb[0].mxu0 }
 0x15a   :  { %v1725_v49 = vpop.f32.mrb[1].mxu0 }
 0x15b   :  { %v1726_v50 = vadd.f32 %v1725_v49, %v1724_v48  ;;  %v1727_v51 = vpop.f32.mrb[2].mxu0 }
 0x15c   :  { %v1728_v52 = vpop.f32.mrb[3].mxu0 }
 0x15d   :  { %v225_v53 = vmul.f32 %v1726_v50, %v1726_v50 }
 0x15f   :  { %226 = vadd.xlane.f32.xlu1 %v225_v53 }
 0x1ec   :  { %v227_v6 = vpop.xlane.xlu1 %226 }
 0x1ed   :  { %v229_v7 = vmul.f32 0.0078125, %v227_v6 }
 0x1ef   :  { %v230_v8 = vadd.f32 1e-06, %v229_v7 }
 0x1f1   :  { %2007 = vrsqrt.f32 %v230_v8 }
 0x1fb   :  { %v2008_v9 = vpop.eup %2007 }
 0x1fc   :  { %v232_v10 = vmul.f32 %v2008_v9, %v1726_v50 }
 0x1fe   :  { %v240_v11 = vpack.c.bf16 %v232_v10, %v232_v10 }
 0x200   :  { %467 = vmatmul.mubr.bf16.vlgmr.msra.gmra.mrb[0].mxu1 %v240_v11 }
 0x201   :  { %1819 = vmatprep.mubr.msk.bf16.mxu1 %vm2090_vm4, %v2089_v36 }
 0x2d3   :  { %v468_v13 = vpop.f32.mrb[0].mxu1 }
 0x2d4   :  { %v478_v14 = vmul.f32 %v475_v12, %v468_v13  ;;  %v470_v15 = vpop.f32.mrb[1].mxu1 }
 0x2d5   :  { %489 = vrot.lane.b32.xlu1 %v470_v15, %s2087_s6  ;;  %v472_v16 = vpop.f32.mrb[2].mxu1  ;;  %v488_v25 = vmul.f32 %v475_v12, %v470_v15  ;;  %v2352_v55 = vpack.c.bf16 %v470_v15, %v470_v15 }
 0x2d6   :  { %v473_v17 = vpop.f32.mrb[3].mxu1 }
 0x2d9   :  { %493 = vrot.lane.b32.xlu1 %v470_v15, %s2088_s21 }
 0x2dd   :  { %479 = vrot.lane.b32.xlu1 %v468_v13, %s2087_s6 }
 0x2e1   :  { %483 = vrot.lane.b32.xlu1 %v468_v13, %s2088_s21 }
 0x347   :  { %v490_v21 = vpop.permute.xlu1 %489 }
 0x348   :  { %v491_v22 = vmul.f32 %v490_v21, %v476_v20 }
 0x34a   :  { %v492_v27 = vadd.f32 %v491_v22, %v488_v25 }
 0x34b   :  { %v494_v26 = vpop.permute.xlu1 %493 }
 0x34c   :  { %v495_v28 = vmul.f32 %v494_v26, %v477_v24 }
 0x34e   :  { %v496_v29 = vadd.f32 %v495_v28, %v492_v27 }
 0x34f   :  { %v480_v30 = vpop.permute.xlu1 %479 }
 0x350   :  { %v481_v31 = vmul.f32 %v480_v30, %v476_v20  ;;  %498 = vxpose.xlu1.b32.start.end [1/1] (short) (narrow) %v496_v29, 64 }
 0x352   :  { %v482_v32 = vadd.f32 %v481_v31, %v478_v14 }
 0x353   :  { %v484_v33 = vpop.permute.xlu1 %483 }
 0x354   :  { %v485_v34 = vmul.f32 %v484_v33, %v477_v24 }
 0x356   :  { %v486_v35 = vadd.f32 %v485_v34, %v482_v32 }
 0x358   :  { %v487_v43 = vpack.c.bf16 %v486_v35, %v486_v35 }
 0x3d0   :  { %v514_v37 = vpop.trf.xlu1 }
 0x3d4   :  { %v515_v38 = vpop.trf.xlu1 }
 0x3d5   :  { %v530_v39 = vpack.c.bf16 %v515_v38, %v514_v37 }
 0x3d7   :  { %1782 = vmatpush3.bf16.msra.mxu0 %v530_v39 }
 0x3d8   :  { %v516_v40 = vpop.trf.xlu1  ;;  %1783 = vmatprep.subr.bf16.mxu0 %v2089_v36 }
 0x3dc   :  { %v517_v41 = vpop.trf.xlu1 }
 0x3dd   :  { %v531_v42 = vpack.c.bf16 %v517_v41, %v516_v40 }
 0x3df   :  { %1784 = vmatpush3.bf16.msra.mxu0 %v531_v42 }
 0x3e0   :  { %1789 = vmatprep.subr.bf16.mxu0 %v2089_v36  ;;  %v518_v15 = vpop.trf.xlu1 }
 0x3e2   :  { %1786 = vmatmul.mubr.msk.bf16.vlgmr.msra.gmra.mrb[4].mxu0 %vm537_vm5, %v487_v43 }
 0x3e3   :  { %1791 = vmatprep.mubr.msk.bf16.mxu0 %vm2090_vm4, %v2089_v36 }
 0x3e4   :  { %v519_v16 = vpop.trf.xlu1 }
 0x3e5   :  { %v532_v26 = vpack.c.bf16 %v519_v16, %v518_v15 }
 0x3e8   :  { %v520_v17 = vpop.trf.xlu1 }
 0x3ec   :  { %v521_v20 = vpop.trf.xlu1 }
 0x3ed   :  { %v533_v27 = vpack.c.bf16 %v521_v20, %v520_v17 }
 0x4b5   :  { %v575_v45 = vpop.f32.mrb[4].mxu0 }
 0x4b6   :  { %v581_v46 = vsel %vm536_vm6, %v575_v45, -1e+30  ;;  %v1787_v47 = vpop.f32.mrb[5].mxu0 }
 0x4b7   :  { %v578_v48 = vpop.f32.mrb[6].mxu0  ;;  %v583_v49 = vsel %vm582_vm7, %v581_v46, -inf }
 0x4b8   :  { %584 = vmax.xlane.f32.xlu0 %v583_v49  ;;  %v1788_v50 = vpop.f32.mrb[7].mxu0 }
 0x545   :  { %v585_v51 = vpop.xlane.xlu0 %584 }
 0x546   :  { %v586_v52 = vsub.f32 %v581_v46, %v585_v51 }
 0x548   :  { %v587_v53 = vmul.f32 1.442695, %v586_v52 }
 0x54a   :  { %2009 = vpow2.f32 %v587_v53 }
 0x554   :  { %v2010_v18 = vpop.eup %2009 }
 0x555   :  { %v589_v54 = vsel %vm582_vm7, %v2010_v18, 0.0 }
 0x556   :  { %590 = vadd.xlane.f32.xlu0 %v589_v54 }
 0x56c   :  { %596 = vrot.lane.b32.xlu0 %v2352_v55, %s2091_s2 }
 0x570   :  { %646 = vrot.lane.b32.xlu0 %v487_v43, %s2092_s3 }
 0x5e3   :  { %v591_v56 = vpop.xlane.xlu0 %590 }
 0x5e4   :  { %2011 = vrcp.f32 %v591_v56 }
 0x5e7   :  { %v597_v57 = vpop.permute.xlu0 %596 }
 0x5e8   :  { %v603_v58 = vsel %vm601_vm8, %v597_v57, 0 }
 0x5e9   :  { %1790 = vmatpush3.bf16.msra.mxu0 %v603_v58 }
 0x5ea   :  { %1795 = vmatprep.subr.bf16.mxu0 %v2089_v36 }
 0x5eb   :  { %v647_v62 = vpop.permute.xlu0 %646 }
 0x5ee   :  { %v2012_v59 = vpop.eup %2011 }
 0x5ef   :  { %v593_v60 = vmul.f32 %v2012_v59, %v2010_v18 }
 0x5f1   :  { %v594_v61 = vpack.c.bf16 %v593_v60, %v593_v60 }
 0x5f3   :  { %1792 = vmatmul.mubr.msk.bf16.vlgmr.msra.gmra.mrb[8].mxu0 %vm582_vm7, %v594_v61 }
 0x5f4   :  { %1796 = vmatpush3.bf16.msra.mxu0 %v530_v39  ;;  %1799 = vmatprep.mubr.msk.bf16.mxu0 %vm2090_vm4, %v2089_v36 }
 0x5f5   :  { %1797 = vmatprep.subr.bf16.mxu0 %v2089_v36 }
 0x5f8   :  { %1798 = vmatpush3.bf16.msra.mxu0 %v531_v42 }
 0x5f9   :  { %1803 = vmatprep.subr.bf16.mxu0 %v2089_v36 }
 0x5fb   :  { %1800 = vmatmul.mubr.msk.bf16.vlgmr.msra.gmra.mrb[12].mxu0 %vm537_vm5, %v647_v62 }
 0x5fc   :  { %1804 = vmatpush3.bf16.msra.mxu0 %v603_v58  ;;  %1805 = vmatprep.mubr.msk.bf16.mxu0 %vm2090_vm4, %v2089_v36 }
 0x5fd   :  { %1809 = vmatprep.subr.bf16.mxu0 %v2089_v36 }
 0x6c6   :  { %v2368_v63 = vpop.f32.mrb[8].mxu0 }
 0x6c7   :  { %v1793_v0 = vpop.f32.mrb[9].mxu0 }
 0x6c8   :  { %v642_v2 = vpop.f32.mrb[10].mxu0 }
 0x6c9   :  { %v1794_v3 = vpop.f32.mrb[11].mxu0 }
 0x6ca   :  { %v1933_v3 = vld [vmem:[%s2631_s7] sm:$0xff]  }
 0x6ce   :  { %v685_v4 = vpop.f32.mrb[12].mxu0 }
 0x6cf   :  { %v691_v5 = vsel %vm536_vm6, %v685_v4, -1e+30  ;;  %v1801_v6 = vpop.f32.mrb[13].mxu0  ;;  %v1934_v4 = vld [vmem:[%s2631_s7 + $0x8] sm:$0xff]  }
 0x6d0   :  { %v688_v7 = vpop.f32.mrb[14].mxu0  ;;  %v692_v8 = vsel %vm582_vm7, %v691_v5, -inf  ;;  %v1936_v6 = vld [vmem:[%s2631_s7 + $0x18] sm:$0xff]  }
 0x6d1   :  { %693 = vmax.xlane.f32.xlu0 %v692_v8  ;;  %v1802_v9 = vpop.f32.mrb[15].mxu0  ;;  %v1937_v7 = vld [vmem:[%s2631_s7 + $0x20] sm:$0xff]   ;;  %v1938_v8 = vld [vmem:[%s2631_s7 + $0x28] sm:$0xff]  }
 0x6d2   :  { %v1939_v9 = vld [vmem:[%s2631_s7 + $0x30] sm:$0xff]  }
 0x6e7   :  { %747 = vrot.lane.b32.xlu0 %v487_v43, %s2091_s2 }
 0x6eb   :  { %853 = vrot.lane.b32.xlu0 %v487_v43, %s2093_s4 }
 0x75e   :  { %v694_v10 = vpop.xlane.xlu0 %693 }
 0x75f   :  { %v695_v11 = vsub.f32 %v691_v5, %v694_v10  ;;  %v1935_v5 = vld [vmem:[%s2631_s7 + $0x10] sm:$0xff]   ;;  %v1940_v10 = vld [vmem:[%s2631_s7 + $0x38] sm:$0xff]  }
 0x761   :  { %v696_v12 = vmul.f32 1.442695, %v695_v11 }
 0x762   :  { %v748_v28 = vpop.permute.xlu0 %747 }
 0x763   :  { %2013 = vpow2.f32 %v696_v12 }
 0x766   :  { %v854_v29 = vpop.permute.xlu0 %853 }
 0x76d   :  { %v2014_v13 = vpop.eup %2013 }
 0x76e   :  { %v698_v14 = vsel %vm582_vm7, %v2014_v13, 0.0 }
 0x76f   :  { %699 = vadd.xlane.f32.xlu1 %v698_v14 }
 0x7fc   :  { %v700_v21 = vpop.xlane.xlu1 %699 }
 0x7fd   :  { %2015 = vrcp.f32 %v700_v21 }
 0x807   :  { %v2016_v22 = vpop.eup %2015 }
 0x808   :  { %v702_v24 = vmul.f32 %v2016_v22, %v2014_v13 }
 0x80a   :  { %v703_v25 = vpack.c.bf16 %v702_v24, %v702_v24 }
 0x80c   :  { %1806 = vmatmul.mubr.msk.bf16.vlgmr.msra.gmra.mrb[16].mxu0 %vm582_vm7, %v703_v25 }
 0x80d   :  { %1810 = vmatpush3.bf16.msra.mxu0 %v532_v26  ;;  %1813 = vmatprep.mubr.msk.bf16.mxu0 %vm2090_vm4, %v2089_v36 }
 0x80e   :  { %1811 = vmatprep.subr.bf16.mxu0 %v2089_v36 }
 0x811   :  { %1812 = vmatpush3.bf16.msra.mxu0 %v533_v27 }
 0x812   :  { %1823 = vmatprep.subr.bf16.mxu0 %v2089_v36 }
 0x814   :  { %1814 = vmatmul.mubr.msk.bf16.vlgmr.msra.gmra.mrb[20].mxu0 %vm537_vm5, %v748_v28  ;;  %v1941_v28 = vld [vmem:[%s2632_s8] ss:$16 sps:$4 sm:$0xff]  }
 0x815   :  { %1824 = vmatpush3.bf16.msra.mxu0 %v532_v26  ;;  %1827 = vmatprep.mubr.msk.bf16.mxu0 %vm2090_vm4, %v2089_v36 }
 0x816   :  { %1825 = vmatprep.subr.bf16.mxu0 %v2089_v36 }
 0x819   :  { %1826 = vmatpush3.bf16.msra.mxu0 %v533_v27 }
 0x81a   :  { %1837 = vmatprep.subr.bf16.mxu0 %v2089_v36 }
 0x81c   :  { %1828 = vmatmul.mubr.msk.bf16.vlgmr.msra.gmra.mrb[24].mxu0 %vm537_vm5, %v854_v29  ;;  %v1943_v29 = vld [vmem:[%s2632_s8 + $0x4] ss:$16 sps:$4 sm:$0xff]  }
 0x81d   :  { %1853 = vmatprep.mubr.msk.bf16.mxu0 %vm2090_vm4, %v2089_v36  ;;  %1838 = vmatpush3.bf16.msra.mxu0 %v1933_v3 }
 0x81e   :  { %1839 = vmatprep.subr.bf16.mxu0 %v2089_v36 }
 0x821   :  { %1840 = vmatpush3.bf16.msra.mxu0 %v1934_v4 }
 0x822   :  { %1841 = vmatprep.subr.bf16.mxu0 %v2089_v36 }
 0x825   :  { %1842 = vmatpush3.bf16.msra.mxu0 %v1935_v5 }
 0x826   :  { %1843 = vmatprep.subr.bf16.mxu0 %v2089_v36 }
 0x829   :  { %1844 = vmatpush3.bf16.msra.mxu0 %v1936_v6  ;;  %v1989_v6 = vld [vmem:[%s2633_s9 + $0x40] sm:$0xff]  }
 0x82a   :  { %1845 = vmatprep.subr.bf16.mxu0 %v2089_v36 }
 0x82d   :  { %1846 = vmatpush3.bf16.msra.mxu0 %v1937_v7  ;;  %v1990_v7 = vld [vmem:[%s2633_s9] sm:$0xff]  }
 0x82e   :  { %1847 = vmatprep.subr.bf16.mxu0 %v2089_v36 }
 0x831   :  { %1848 = vmatpush3.bf16.msra.mxu0 %v1938_v8  ;;  %v1991_v8 = vld [vmem:[%s2633_s9 + $0x48] sm:$0xff]  }
 0x832   :  { %1849 = vmatprep.subr.bf16.mxu0 %v2089_v36 }
 0x835   :  { %1850 = vmatpush3.bf16.msra.mxu0 %v1939_v9  ;;  %v1992_v9 = vld [vmem:[%s2633_s9 + $0x8] sm:$0xff]  }
 0x836   :  { %1851 = vmatprep.subr.bf16.mxu0 %v2089_v36 }
 0x839   :  { %1852 = vmatpush3.bf16.msra.mxu0 %v1940_v10  ;;  %v1993_v10 = vld [vmem:[%s2633_s9 + $0x50] sm:$0xff]  }
 0x8df   :  { %v741_v30 = vpop.f32.mrb[16].mxu0 }
 0x8e0   :  { %v1807_v31 = vpop.f32.mrb[17].mxu0 }
 0x8e1   :  { %v744_v32 = vpop.f32.mrb[18].mxu0  ;;  %v1952_v31 = vld [vmem:[%s2632_s8 + $0x2c] ss:$16 sps:$4 sm:$0xff]  }
 0x8e2   :  { %v1808_v33 = vpop.f32.mrb[19].mxu0  ;;  %v1947_v32 = vld [vmem:[%s2632_s8 + $0x20] ss:$16 sps:$4 sm:$0xff]  }
 0x8e3   :  { %v1950_v33 = vld [vmem:[%s2632_s8 + $0x28] ss:$16 sps:$4 sm:$0xff]  }
 0x8e7   :  { %v786_v34 = vpop.f32.mrb[20].mxu0 }
 0x8e8   :  { %v792_v35 = vsel %vm536_vm6, %v786_v34, -1e+30  ;;  %v1815_v37 = vpop.f32.mrb[21].mxu0  ;;  %v1955_v34 = vld [vmem:[%s2632_s8 + $0x44] ss:$16 sps:$4 sm:$0xff]  }
 0x8e9   :  { %v789_v38 = vpop.f32.mrb[22].mxu0  ;;  %v793_v39 = vsel %vm582_vm7, %v792_v35, -inf  ;;  %v1953_v37 = vld [vmem:[%s2632_s8 + $0x40] ss:$16 sps:$4 sm:$0xff]  }
 0x8ea   :  { %794 = vmax.xlane.f32.xlu0 %v793_v39  ;;  %v1816_v40 = vpop.f32.mrb[23].mxu0  ;;  %v1956_v38 = vld [vmem:[%s2632_s8 + $0x48] ss:$16 sps:$4 sm:$0xff]   ;;  %v1961_v39 = vld [vmem:[%s2632_s8 + $0x64] ss:$16 sps:$4 sm:$0xff]  }
 0x8eb   :  { %v1964_v40 = vld [vmem:[%s2632_s8 + $0x6c] ss:$16 sps:$4 sm:$0xff]  }
 0x8ef   :  { %v892_v41 = vpop.f32.mrb[24].mxu0 }
 0x8f0   :  { %v898_v42 = vsel %vm536_vm6, %v892_v41, -1e+30  ;;  %v1829_v43 = vpop.f32.mrb[25].mxu0  ;;  %v1959_v41 = vld [vmem:[%s2632_s8 + $0x60] ss:$16 sps:$4 sm:$0xff]  }
 0x8f1   :  { %v895_v45 = vpop.f32.mrb[26].mxu0  ;;  %v899_v46 = vsel %vm582_vm7, %v898_v42, -inf }
 0x8f2   :  { %900 = vmax.xlane.f32.xlu1 %v899_v46  ;;  %v1830_v47 = vpop.f32.mrb[27].mxu0 }
 0x900   :  { %955 = vrot.lane.b32.xlu0 %v741_v30, %s2093_s4  ;;  %v1944_v30 = vld [vmem:[%s2632_s8 + $0x8] ss:$16 sps:$4 sm:$0xff]  }
 0x977   :  { %v795_v48 = vpop.xlane.xlu0 %794 }
 0x978   :  { %v796_v49 = vsub.f32 %v792_v35, %v795_v48  ;;  %v1958_v35 = vld [vmem:[%s2632_s8 + $0x4c] ss:$16 sps:$4 sm:$0xff]  }
 0x97a   :  { %v797_v50 = vmul.f32 1.442695, %v796_v49 }
 0x97b   :  { %v956_v21 = vpop.permute.xlu0 %955 }
 0x97c   :  { %2017 = vpow2.f32 %v797_v50  ;;  %v1967_v50 = vld [vmem:[%s2632_s8 + $0x84] ss:$16 sps:$4 sm:$0xff]  }
 0x97f   :  { %v901_v51 = vpop.xlane.xlu1 %900 }
 0x980   :  { %v902_v52 = vsub.f32 %v898_v42, %v901_v51  ;;  %v1962_v42 = vld [vmem:[%s2632_s8 + $0x68] ss:$16 sps:$4 sm:$0xff]   ;;  %v1970_v51 = vld [vmem:[%s2632_s8 + $0x8c] ss:$16 sps:$4 sm:$0xff]  }
 0x982   :  { %v903_v53 = vmul.f32 1.442695, %v902_v52  ;;  %v1968_v52 = vld [vmem:[%s2632_s8 + $0x88] ss:$16 sps:$4 sm:$0xff]  }
 0x984   :  { %2019 = vpow2.f32 %v903_v53  ;;  %v1973_v53 = vld [vmem:[%s2632_s8 + $0xa4] ss:$16 sps:$4 sm:$0xff]  }
 0x986   :  { %v2018_v18 = vpop.eup %2017 }
 0x987   :  { %v799_v19 = vsel %vm582_vm7, %v2018_v18, 0.0 }
 0x988   :  { %800 = vadd.xlane.f32.xlu1 %v799_v19  ;;  %v1974_v19 = vld [vmem:[%s2632_s8 + $0xa8] ss:$16 sps:$4 sm:$0xff]  }
 0x98e   :  { %v2020_v44 = vpop.eup %2019 }
 0x98f   :  { %v905_v54 = vsel %vm582_vm7, %v2020_v44, 0.0 }
 0x990   :  { %906 = vadd.xlane.f32.xlu1 %v905_v54  ;;  %v1979_v54 = vld [vmem:[%s2632_s8 + $0xc4] ss:$16 sps:$4 sm:$0xff]  }
 0x9a1   :  { %805 = vrot.lane.b32.xlu1 %v2352_v55, %s2093_s4 }
 0xa15   :  { %v801_v56 = vpop.xlane.xlu1 %800 }
 0xa16   :  { %2021 = vrcp.f32 %v801_v56  ;;  %v1982_v56 = vld [vmem:[%s2632_s8 + $0xcc] ss:$16 sps:$4 sm:$0xff]  }
 0xa1d   :  { %v907_v57 = vpop.xlane.xlu1 %906 }
 0xa1e   :  { %2023 = vrcp.f32 %v907_v57  ;;  %v1977_v57 = vld [vmem:[%s2632_s8 + $0xc0] ss:$16 sps:$4 sm:$0xff]  }
 0xa20   :  { %v2022_v58 = vpop.eup %2021 }
 0xa21   :  { %v803_v59 = vmul.f32 %v2022_v58, %v2018_v18  ;;  %v806_v60 = vpop.permute.xlu1 %805  ;;  %v1971_v18 = vld [vmem:[%s2632_s8 + $0xa0] ss:$16 sps:$4 sm:$0xff]   ;;  %v1980_v58 = vld [vmem:[%s2632_s8 + $0xc8] ss:$16 sps:$4 sm:$0xff]  }
 0xa22   :  { %v811_v61 = vsel %vm601_vm8, %v806_v60, 0  ;;  %v1988_v60 = vld [vmem:[%s2632_s8 + $0xec] ss:$16 sps:$4 sm:$0xff]  }
 0xa23   :  { %1818 = vmatpush3.bf16.msra.mxu1 %v811_v61  ;;  %v804_v62 = vpack.c.bf16 %v803_v59, %v803_v59  ;;  %v1985_v59 = vld [vmem:[%s2632_s8 + $0xe4] ss:$16 sps:$4 sm:$0xff]  }
 0xa24   :  { %1831 = vmatprep.subr.bf16.mxu1 %v2089_v36 }
 0xa26   :  { %1820 = vmatmul.mubr.msk.bf16.vlgmr.msra.gmra.mrb[4].mxu1 %vm582_vm7, %v804_v62  ;;  %v1986_v62 = vld [vmem:[%s2632_s8 + $0xe8] ss:$16 sps:$4 sm:$0xff]  }
 0xa27   :  { %1832 = vmatpush3.bf16.msra.mxu1 %v811_v61  ;;  %1833 = vmatprep.mubr.msk.bf16.mxu1 %vm2090_vm4, %v2089_v36  ;;  %v966_v36 = vsel %vm537_vm5, %v2368_v63, %v956_v21  ;;  %v1946_v63 = vld [vmem:[%s2632_s8 + $0xc] ss:$16 sps:$4 sm:$0xff]   ;;  %v1983_v61 = vld [vmem:[%s2632_s8 + $0xe0] ss:$16 sps:$4 sm:$0xff]  }
 0xa28   :  { %v2024_v55 = vpop.eup %2023  ;;  %1276 = vmatprep.subr.bf16.mxu1 %v1943_v29  ;;  %1317 = vmatprep.subr.bf16.mxu0 %v1946_v63  ;;  %v2002_v21 = vld [vmem:[%s2633_s9 + $0x30] sm:$0xff]  }
 0xa29   :  { %v909_v0 = vmul.f32 %v2024_v55, %v2020_v44  ;;  %v1976_v44 = vld [vmem:[%s2632_s8 + $0xac] ss:$16 sps:$4 sm:$0xff]  }
 0xa2b   :  { %v910_v2 = vpack.c.bf16 %v909_v0, %v909_v0 }
 0xa2e   :  { %1834 = vmatmul.mubr.msk.bf16.vlgmr.msra.gmra.mrb[8].mxu1 %vm582_vm7, %v910_v2 }
 0xa2f   :  { %1308 = vmatprep.mubr.bf16.mxu1 %v2085_v1  ;;  %1277 = vmatpush1.bf16.msra.mxu1 %v1941_v28 }
 0xaf9   :  { %v847_v11 = vpop.f32.mrb[4].mxu1 }
 0xafa   :  { %959 = vrot.lane.b32.xlu1 %v847_v11, %s2091_s2  ;;  %v1821_v12 = vpop.f32.mrb[5].mxu1  ;;  %v1994_v11 = vld [vmem:[%s2633_s9 + $0x10] sm:$0xff]  }
 0xafb   :  { %v850_v13 = vpop.f32.mrb[6].mxu1  ;;  %v1995_v12 = vld [vmem:[%s2633_s9 + $0x58] sm:$0xff]  }
 0xafc   :  { %v1822_v14 = vpop.f32.mrb[7].mxu1  ;;  %v1996_v13 = vld [vmem:[%s2633_s9 + $0x18] sm:$0xff]  }
 0xafd   :  { %v1997_v14 = vld [vmem:[%s2633_s9 + $0x60] sm:$0xff]  }
 0xb01   :  { %v948_v15 = vpop.f32.mrb[8].mxu1 }
 0xb02   :  { %963 = vrot.lane.b32.xlu1 %v948_v15, %s2092_s3  ;;  %v1835_v16 = vpop.f32.mrb[9].mxu1  ;;  %v1998_v15 = vld [vmem:[%s2633_s9 + $0x20] sm:$0xff]  }
 0xb03   :  { %v951_v17 = vpop.f32.mrb[10].mxu1  ;;  %v1999_v16 = vld [vmem:[%s2633_s9 + $0x68] sm:$0xff]  }
 0xb04   :  { %v1836_v20 = vpop.f32.mrb[11].mxu1  ;;  %v2000_v17 = vld [vmem:[%s2633_s9 + $0x28] sm:$0xff]  }
 0xb05   :  { %v2001_v20 = vld [vmem:[%s2633_s9 + $0x70] sm:$0xff]  }
 0xb6c   :  { %v960_v22 = vpop.permute.xlu1 %959 }
 0xb6d   :  { %v968_v24 = vsel %vm967_vm9, %v966_v36, %v960_v22  ;;  %v2003_v22 = vld [vmem:[%s2633_s9 + $0x78] sm:$0xff]  }
 0xb6e   :  { %v2004_v36 = vld [vmem:[%s2633_s9 + $0x38] sm:$0xff]   ;;  %s2094_s9 = smov [#allocation4]  }
 0xb6f   :  { %s1577_s30 = sshll.u32 %s2094_s9, 4  ;;  %s1578_s30 = int_to_ptr.vmem [resolvable:$true] %s1577_s30 }
 0xb70   :  { %s2037_s13 = scalar_lea.vmem %s1578_s30, 128  ;;  %p2042_p1 = scmp.lt.s32.totalorder %s1578_s30, %s1578_s30 }
 0xb71   :  { %p2038_p0 = scmp.ne.s32.totalorder %s1578_s30, %s2037_s13  ;;  %p2043_p2 = scmp.lt.s32.totalorder %s2037_s13, %s2037_s13 }
 0xb73   :  { %p2044_p3 = por %p2043_p2, %p2042_p1 }
 0xb74   :  { %v964_v25 = vpop.permute.xlu1 %963 }
 0xb75   :  { %v970_v26 = vsel %vm969_vm10, %v968_v24, %v964_v25  ;;  %p2045_p4 = pnand %p2044_p3, %p2038_p0 }
 0xb76   :  { %v971_v27 = vpack.c.bf16 %v970_v26, %v970_v26 }
 0xb78   :  { %1854 = vmatmul.mubr.bf16.vlgmr.msra.gmra.mrb[28].mxu0 %v971_v27 }
 0xb79   :  { %1349 = vmatprep.mubr.bf16.mxu0 %v2085_v1  ;;  %v1949_v1 = vld [vmem:[%s2632_s8 + $0x24] ss:$16 sps:$4 sm:$0xff]   ;;  %1318 = vmatpush1.bf16.msra.mxu0 %v1944_v30 }
 0xb7a   :  { %1278 = vmatprep.subr.bf16.mxu1 %v1949_v1  ;;  %1319 = vmatprep.subr.bf16.mxu0 %v1952_v31 }
 0xb7b   :  { %1279 = vmatpush1.bf16.msra.mxu1 %v1947_v32 }
 0xb7c   :  { %1280 = vmatprep.subr.bf16.mxu1 %v1955_v34 }
 0xb7d   :  { %1320 = vmatpush1.bf16.msra.mxu0 %v1950_v33 }
 0xb7e   :  { %1321 = vmatprep.subr.bf16.mxu0 %v1958_v35 }
 0xb7f   :  { %1281 = vmatpush1.bf16.msra.mxu1 %v1953_v37 }
 0xb80   :  { %1282 = vmatprep.subr.bf16.mxu1 %v1961_v39 }
 0xb81   :  { %1322 = vmatpush1.bf16.msra.mxu0 %v1956_v38 }
 0xb82   :  { %1323 = vmatprep.subr.bf16.mxu0 %v1964_v40 }
 0xb83   :  { %1283 = vmatpush1.bf16.msra.mxu1 %v1959_v41 }
 0xb84   :  { %1284 = vmatprep.subr.bf16.mxu1 %v1967_v50 }
 0xb85   :  { %1324 = vmatpush1.bf16.msra.mxu0 %v1962_v42 }
 0xb86   :  { %1325 = vmatprep.subr.bf16.mxu0 %v1970_v51 }
 0xb89   :  { %1326 = vmatpush1.bf16.msra.mxu0 %v1968_v52 }
 0xb8a   :  { %1327 = vmatprep.subr.bf16.mxu0 %v1976_v44 }
 0xb8d   :  { %1328 = vmatpush1.bf16.msra.mxu0 %v1974_v19 }
 0xb8e   :  { %1329 = vmatprep.subr.bf16.mxu0 %v1982_v56 }
 0xb91   :  { %1330 = vmatpush1.bf16.msra.mxu0 %v1980_v58 }
 0xb92   :  { %1331 = vmatprep.subr.bf16.mxu0 %v1988_v60 }
 0xb95   :  { %1332 = vmatpush1.bf16.msra.mxu0 %v1986_v62 }
 0xc4b   :  { %v1070_v43 = vpop.f32.mrb[28].mxu0 }
 0xc4c   :  { %v2495_v45 = vadd.f32 %v1070_v43, %v2221_v23  ;;  %v1855_v46 = vpop.f32.mrb[29].mxu0  ;;  %v1965_v23 = vld [vmem:[%s2632_s8 + $0x80] ss:$16 sps:$4 sm:$0xff]  }
 0xc4d   :  { %v1073_v47 = vpop.f32.mrb[30].mxu0  ;;  %1285 = vmatpush1.bf16.msra.mxu1 %v1965_v23 }
 0xc4e   :  { %v1856_v48 = vpop.f32.mrb[31].mxu0  ;;  %v1076_v49 = vmul.f32 %v2495_v45, %v2495_v45  ;;  %1286 = vmatprep.subr.bf16.mxu1 %v1973_v53 }
 0xc50   :  { %1077 = vadd.xlane.f32.xlu1 %v1076_v49 }
 0xc51   :  { %1287 = vmatpush1.bf16.msra.mxu1 %v1971_v18 }
 0xc52   :  { %1288 = vmatprep.subr.bf16.mxu1 %v1979_v54 }
 0xc55   :  { %1289 = vmatpush1.bf16.msra.mxu1 %v1977_v57 }
 0xc56   :  { %1290 = vmatprep.subr.bf16.mxu1 %v1985_v59 }
 0xc59   :  { %1291 = vmatpush1.bf16.msra.mxu1 %v1983_v61 }
 0xc5a   :  { %1759 = vmatprep.subr.bf16.mxu1 %v1989_v6 }
 0xcdd   :  { %v1078_v55 = vpop.xlane.xlu1 %1077 }
 0xcde   :  { %v1079_v0 = vmul.f32 0.0078125, %v1078_v55 }
 0xce0   :  { %v1080_v2 = vadd.f32 1e-06, %v1079_v0 }
 0xce2   :  { %2025 = vrsqrt.f32 %v1080_v2 }
 0xcec   :  { %v2026_v3 = vpop.eup %2025 }
 0xced   :  { %v1082_v4 = vmul.f32 %v2026_v3, %v2495_v45 }
 0xcef   :  { %v1083_v5 = vpack.c.bf16 %v1082_v4, %v1082_v4 }
 0xcf1   :  { %1309 = vmatmul.mubr.bf16.vlgmr.msra.gmra.mrb[12].mxu1 %v1083_v5  ;;  %1350 = vmatmul.mubr.bf16.vlgmr.msra.gmra.mrb[32].mxu0 %v1083_v5 }
 0xcf2   :  { %1760 = vmatpush3.bf16.msra.mxu1 %v1990_v7 }
 0xcf3   :  { %1761 = vmatprep.subr.bf16.mxu1 %v1991_v8 }
 0xcf6   :  { %1762 = vmatpush3.bf16.msra.mxu1 %v1992_v9 }
 0xcf7   :  { %1763 = vmatprep.subr.bf16.mxu1 %v1993_v10 }
 0xcfa   :  { %1764 = vmatpush3.bf16.msra.mxu1 %v1994_v11 }
 0xcfb   :  { %1765 = vmatprep.subr.bf16.mxu1 %v1995_v12 }
 0xcfe   :  { %1766 = vmatpush3.bf16.msra.mxu1 %v1996_v13 }
 0xcff   :  { %1767 = vmatprep.subr.bf16.mxu1 %v1997_v14 }
 0xd02   :  { %1768 = vmatpush3.bf16.msra.mxu1 %v1998_v15 }
 0xd03   :  { %1769 = vmatprep.subr.bf16.mxu1 %v1999_v16 }
 0xd06   :  { %1770 = vmatpush3.bf16.msra.mxu1 %v2000_v17 }
 0xd07   :  { %1771 = vmatprep.subr.bf16.mxu1 %v2001_v20 }
 0xd0a   :  { %1772 = vmatpush3.bf16.msra.mxu1 %v2002_v21 }
 0xd0b   :  { %1773 = vmatprep.subr.bf16.mxu1 %v2003_v22 }
 0xd0e   :  { %1774 = vmatpush3.bf16.msra.mxu1 %v2004_v36 }
 0xdc4   :  { %v1310_v24 = vpop.f32.mrb[12].mxu1  ;;  %v1351_v25 = vpop.f32.mrb[32].mxu0 }
 0xdc5   :  { %v1689_v26 = vmul.f32 -1.442695, %v1310_v24  ;;  %v1312_v27 = vpop.f32.mrb[13].mxu1  ;;  %v1353_v28 = vpop.f32.mrb[33].mxu0 }
 0xdc6   :  { %v1690_v29 = vmul.f32 -1.442695, %v1312_v27  ;;  %v1314_v30 = vpop.f32.mrb[14].mxu1  ;;  %v1355_v63 = vpop.f32.mrb[34].mxu0 }
 0xdc7   :  { %2027 = vpow2.f32 %v1689_v26  ;;  %v1315_v1 = vpop.f32.mrb[15].mxu1  ;;  %v1356_v31 = vpop.f32.mrb[35].mxu0 }
 0xdc8   :  { %2029 = vpow2.f32 %v1690_v29 }
 0xdd1   :  { %v2028_v32 = vpop.eup %2027 }
 0xdd2   :  { %v2030_v33 = vpop.eup %2029  ;;  %v1364_v34 = vadd.f32 1.0, %v2028_v32 }
 0xdd3   :  { %v1365_v35 = vadd.f32 1.0, %v2030_v33 }
 0xdd4   :  { %2031 = vrcp.f32 %v1364_v34 }
 0xdd5   :  { %2033 = vrcp.f32 %v1365_v35 }
 0xdde   :  { %v2032_v37 = vpop.eup %2031 }
 0xddf   :  { %v2034_v38 = vpop.eup %2033  ;;  %v1370_v39 = vmul.f32 %v2032_v37, %v1310_v24 }
 0xde0   :  { %v1371_v40 = vmul.f32 %v2034_v38, %v1312_v27 }
 0xde1   :  { %v1372_v41 = vmul.f32 %v1370_v39, %v1351_v25 }
 0xde2   :  { %v1373_v42 = vmul.f32 %v1371_v40, %v1353_v28 }
 0xde3   :  { %v1374_v46 = vpack.c.bf16 %v1372_v41, %v1372_v41 }
 0xde4   :  { %v1375_v43 = vpack.c.bf16 %v1373_v42, %v1373_v42 }
 0xde6   :  { %1536 = vmatprep.mubr.bf16.mxu1 %v1375_v43 }
 0xde7   :  { %1537 = vmatmul.mubr.bf16.vlgmr.msra.gmra.mrb[16].mxu1 %v1374_v46 }
 0xeba   :  { %v1775_v47 = vpop.f32.mrb[16].mxu1 }
 0xebb   :  { %v1776_v48 = vpop.f32.mrb[17].mxu1 }
 0xebc   :  { %v1777_v49 = vadd.f32 %v1776_v48, %v1775_v47  ;;  %v1778_v50 = vpop.f32.mrb[18].mxu1 }
 0xebd   :  { %v1779_v51 = vpop.f32.mrb[19].mxu1 }
 0xebe   :  { %v1539_v23 = vadd.f32 %v1777_v49, %v2495_v45 }
 0xec0   :  { %1544 = vst [vmem:[#allocation4] sm:$0xff] %v1539_v23  ;;  %v1545_v52 = vmul.f32 %v1539_v23, %v1539_v23 }
 0xec2   :  { %1546 = vadd.xlane.f32.xlu0 %v1545_v52 }
 0xec3   :  { %2048 = shalt.err (!%p2045_p4)
}
 0xec4   :  { %s2049_s16 = scalar_lea.hbm %s2636_s12, 128 }
 0xec5   :  { %p2050_p5 = scmp.ne.s32.totalorder %s2636_s12, %s2049_s16  ;;  %p2053_p6 = scmp.lt.u32.totalorder %s2049_s16, %s2636_s12 }
 0xec7   :  { %p2055_p7 = pnand %p2053_p6, %p2050_p5 }
 0xec9   :  { %2058 = shalt.err (!%p2055_p7)
}
 0xeca   :  { %1580 = dma.vmem_to_hbm [thread:$0]  %s1578_s30, 128, %s2636_s12, [#allocation5]   ;;  %v1707_v44 = vld [vmem:[%s2634_s10] ss:$0 sm:$0xff] }
 0xecb   :  { %s2095_s22 = smov [#allocation2]  }
 0xecc   :  { %s1567_s23 = sshll.u32 %s2095_s22, 4  ;;  %s1568_s23 = int_to_ptr.vmem [resolvable:$true] %s1567_s23 }
 0xecd   :  { %s2059_s1 = scalar_lea.vmem %s1568_s23, 128  ;;  %p2064_p9 = scmp.lt.s32.totalorder %s1568_s23, %s1568_s23 }
 0xece   :  { %p2060_p8 = scmp.ne.s32.totalorder %s1568_s23, %s2059_s1  ;;  %p2065_p10 = scmp.lt.s32.totalorder %s2059_s1, %s2059_s1 }
 0xed0   :  { %p2066_p11 = por %p2065_p10, %p2064_p9 }
 0xed2   :  { %p2067_p12 = pnand %p2066_p11, %p2060_p8 }
 0xf4f   :  { %v1547_v45 = vpop.xlane.xlu0 %1546 }
 0xf50   :  { %v1548_v53 = vmul.f32 0.0078125, %v1547_v45 }
 0xf52   :  { %v1549_v18 = vadd.f32 1e-06, %v1548_v53 }
 0xf54   :  { %2035 = vrsqrt.f32 %v1549_v18 }
 0xf5e   :  { %v2036_v19 = vpop.eup %2035 }
 0xf5f   :  { %v1551_v54 = vmul.f32 %v2036_v19, %v1539_v23 }
 0xf61   :  { %v1559_v56 = vmul.f32 %v1707_v44, %v1551_v54 }
 0xf63   :  { %1560 = vst [vmem:[#allocation2] sm:$0xff] %v1559_v56 }
 0xf64   :  { %2070 = shalt.err (!%p2067_p12)
}
 0xf65   :  { %s2071_s2 = scalar_lea.hbm %s2635_s11, 128 }
 0xf66   :  { %p2072_p13 = scmp.ne.s32.totalorder %s2635_s11, %s2071_s2  ;;  %p2075_p0 = scmp.lt.u32.totalorder %s2071_s2, %s2635_s11 }
 0xf68   :  { %p2077_p1 = pnand %p2075_p0, %p2072_p13 }
 0xf6a   :  { %2080 = shalt.err (!%p2077_p1)
}
 0xf6b   :  { %1570 = dma.vmem_to_hbm [thread:$0]  %s1568_s23, 128, %s2635_s11, [#allocation3]  }
 0xf6c   :  { %2081 = dma.done.wait [#allocation3], 128  }
 0xf6d   :  { %2082 = vsyncadd [#allocation3], 4294967168 }
 0xf6e   :  { %2083 = dma.done.wait [#allocation5], 128  }
 0xf6f   :  { %2084 = vsyncadd [#allocation5], 4294967168 }
 0xf70   :  { %1587 = vsyncpa [#allocation3], 1 }
 0xf71   :  { %1588 = vsyncpa [#allocation5], 1 }

</bundles_post_ra>
